<compile_context>
chip_gen: v7x
topology: tpu7x:2x2x1
jax: 0.10.0
libtpu: 0.0.40
codegen_flags: <defaults>
</compile_context>

<pallas_src>
import math

import jax
import jax.numpy as jnp
from jax.experimental import pallas as pl
from jax.experimental.pallas import tpu as pltpu

# ----------------------------- model config (small) -------------------------
B = 2          # batch
S = 8          # sequence length (post padding/truncation)
D = 32         # hidden size
H = 4          # attention heads
DH = D // H    # head dim
FFN = 64       # intermediate size
LAYERS = 2
VOCAB = 64
MAX_POS = 16
EPS = 1e-12    # DistilBERT LayerNorm eps
NEG_INF = -1e9


# ----------------------------- fused encoder kernel -------------------------
def _layernorm(h, g, b):
    mean = jnp.mean(h, axis=-1, keepdims=True)
    var = jnp.mean((h - mean) ** 2, axis=-1, keepdims=True)
    inv = jax.lax.rsqrt(var + EPS)
    return (h - mean) * inv * g + b


def _encoder_kernel(x_ref, bias_ref, eg_ref, eb_ref,
                    wqkv_ref, bqkv_ref, wo_ref, bo_ref,
                    ln1g_ref, ln1b_ref, w1_ref, b1_ref,
                    w2_ref, b2_ref, ln2g_ref, ln2b_ref,
                    cls_ref):
    scale = 1.0 / math.sqrt(DH)

    # Hoisted once: shared additive attention bias (block-diag + key padding).
    bias = bias_ref[...]                                             # [B*S, B*S]

    # Embedding LayerNorm (no zeros-add / extra HBM traffic).
    x = _layernorm(x_ref[...], eg_ref[...], eb_ref[...])             # [B*S, D]

    for l in range(LAYERS):                                          # static unroll
        # ---- fused Q|K|V projection: one lane-dense [D, 3D] matmul.
        # Kept as a traced value (vreg-resident), no scratch round-trip.
        qkv = (jnp.dot(x, wqkv_ref[l], preferred_element_type=jnp.float32)
               + bqkv_ref[l])                                        # [B*S, 3D]

        # ---- multi-head attention, all batches at once ----
        # Scores are computed over all B*S keys; cross-batch entries are killed
        # by the precomputed block-diagonal bias, so softmax/PV stay exact.
        # Output projection is decomposed per head:
        #   ctx @ Wo == sum_h ctx_h @ Wo[h*DH:(h+1)*DH, :]
        # so no unaligned lane concatenation / relayout is needed.
        attn_out = None
        for hi in range(H):
            c0 = hi * DH
            q = qkv[:, c0:c0 + DH]                                   # [B*S, DH]
            k = qkv[:, D + c0:D + c0 + DH]
            v = qkv[:, 2 * D + c0:2 * D + c0 + DH]
            att = jax.lax.dot_general(
                q, k, (((1,), (1,)), ((), ())),
                preferred_element_type=jnp.float32) * scale          # [B*S, B*S]
            att = att + bias
            att = att - jnp.max(att, axis=-1, keepdims=True)
            p = jnp.exp(att)
            p = p * pl.reciprocal(jnp.sum(p, axis=-1, keepdims=True),
                                  approx=True)
            ctx_h = jnp.dot(p, v,
                            preferred_element_type=jnp.float32)      # [B*S, DH]
            contrib = jnp.dot(ctx_h, wo_ref[l, hi],
                              preferred_element_type=jnp.float32)    # [B*S, D]
            attn_out = contrib if attn_out is None else attn_out + contrib
        attn_out = attn_out + bo_ref[l]                              # [B*S, D]
        x = _layernorm(attn_out + x, ln1g_ref[l], ln1b_ref[l])

        # ---- FFN ----
        h1 = jnp.dot(x, w1_ref[l], preferred_element_type=jnp.float32) + b1_ref[l]
        h1 = jax.nn.gelu(h1, approximate=True)
        ffn = jnp.dot(h1, w2_ref[l], preferred_element_type=jnp.float32) + b2_ref[l]
        x = _layernorm(ffn + x, ln2g_ref[l], ln2b_ref[l])

    # Only the CLS rows are returned by the module; write just those.
    cls_ref[...] = jnp.concatenate(
        [x[bi * S:bi * S + 1, :] for bi in range(B)], axis=0
    ).astype(cls_ref.dtype)                                          # [B, D]


@jax.jit
def _encoder_call(x2, bias, eg, eb, wqkv, bqkv, wo, bo,
                  ln1g, ln1b, w1, b1, w2, b2, ln2g, ln2b):
    n_in = 16
    return pl.pallas_call(
        _encoder_kernel,
        out_shape=jax.ShapeDtypeStruct((B, D), jnp.float32),
        in_specs=[pl.BlockSpec(memory_space=pltpu.MemorySpace.VMEM)] * n_in,
        out_specs=pl.BlockSpec(memory_space=pltpu.MemorySpace.VMEM),
    )(x2, bias, eg, eb, wqkv, bqkv, wo, bo, ln1g, ln1b, w1, b1, w2, b2, ln2g, ln2b)


# ----------------------------- parameters -----------------------------------
def init_params(key):
    def nrm(k, shape, std=0.02):
        return (std * jax.random.normal(k, shape)).astype(jnp.float32)

    keys = iter(jax.random.split(key, 2 + 4 * LAYERS))
    params = {
        "word_emb": nrm(next(keys), (VOCAB, D)),
        "pos_emb": nrm(next(keys), (MAX_POS, D)),
        "emb_ln_g": jnp.ones((1, D), jnp.float32),
        "emb_ln_b": jnp.zeros((1, D), jnp.float32),
        # fused Q|K|V weight: [L, D, 3D]
        "wqkv": jnp.stack([nrm(next(keys), (D, 3 * D)) for _ in range(LAYERS)]),
        "bqkv": jnp.zeros((LAYERS, 1, 3 * D), jnp.float32),
        # output projection pre-split per head: [L, H, DH, D]
        "wo": jnp.stack([nrm(next(keys), (H, DH, D)) for _ in range(LAYERS)]),
        "bo": jnp.zeros((LAYERS, 1, D), jnp.float32),
        "ln1_g": jnp.ones((LAYERS, 1, D), jnp.float32),
        "ln1_b": jnp.zeros((LAYERS, 1, D), jnp.float32),
        "w1": jnp.stack([nrm(next(keys), (D, FFN)) for _ in range(LAYERS)]),
        "b1": jnp.zeros((LAYERS, 1, FFN), jnp.float32),
        "w2": jnp.stack([nrm(next(keys), (FFN, D)) for _ in range(LAYERS)]),
        "b2": jnp.zeros((LAYERS, 1, D), jnp.float32),
        "ln2_g": jnp.ones((LAYERS, 1, D), jnp.float32),
        "ln2_b": jnp.zeros((LAYERS, 1, D), jnp.float32),
    }
    return params


# ----------------------------- forward (glue + fused kernel) ----------------
def text_encoder_forward(params, input_ids, attention_mask):
    """input_ids:[B,S] int32, attention_mask:[B,S] {0,1} -> CLS embedding [B,D]."""
    b, s = input_ids.shape
    # Embedding gather + learned positions (plain-JAX glue).
    x = params["word_emb"][input_ids] + params["pos_emb"][:s][None, :, :]   # [B,S,D]
    x2 = x.reshape(b * s, D).astype(jnp.float32)

    # One additive attention bias [B*S, B*S], shared by all layers/heads:
    #   -1e9 for cross-batch pairs (block-diagonal constraint) and for padded
    #   keys (key-padding mask); 0 elsewhere.  Queries are never masked,
    #   matching the PyTorch/HF behaviour.
    rows = jnp.arange(b * s)
    same_batch = (rows[:, None] // s) == (rows[None, :] // s)                # [BS,BS]
    key_valid = (attention_mask.reshape(-1)[None, :] > 0)                   # [1, BS]
    bias = jnp.where(same_batch & key_valid, 0.0, NEG_INF).astype(jnp.float32)

    cls = _encoder_call(
        x2, bias, params["emb_ln_g"], params["emb_ln_b"],
        params["wqkv"], params["bqkv"], params["wo"], params["bo"],
        params["ln1_g"], params["ln1_b"], params["w1"], params["b1"],
        params["w2"], params["b2"], params["ln2_g"], params["ln2_b"])

    return cls   # [B, D] CLS token embedding, matches PyTorch return


# ----------------------------- main ------------------------------------------
if __name__ == "__main__":
    key = jax.random.PRNGKey(0)
    k_param, k_ids = jax.random.split(key)
    params = init_params(k_param)

    # Deterministic "tokenized" batch: ids + attention mask (second row padded).
    input_ids = jax.random.randint(k_ids, (B, S), minval=1, maxval=VOCAB, dtype=jnp.int32)
    input_ids = input_ids.at[:, 0].set(2)  # pretend CLS id
    attention_mask = jnp.ones((B, S), jnp.int32).at[1, 6:].set(0)

    out = text_encoder_forward(params, input_ids, attention_mask)
    out = jax.block_until_ready(out)
    assert out.shape == (B, D) and out.dtype == jnp.float32
    assert bool(jnp.all(jnp.isfinite(out)))
    print("KERNEL_OK")
</pallas_src>

<mosaic_0001>
module attributes {stable_mosaic.version = 11 : i64} {
  func.func @_encoder_kernel(%arg0: memref<16x32xf32, #tpu.memory_space<vmem>>, %arg1: memref<16x16xf32, #tpu.memory_space<vmem>>, %arg2: memref<1x32xf32, #tpu.memory_space<vmem>>, %arg3: memref<1x32xf32, #tpu.memory_space<vmem>>, %arg4: memref<2x32x96xf32, #tpu.memory_space<vmem>>, %arg5: memref<2x1x96xf32, #tpu.memory_space<vmem>>, %arg6: memref<2x4x8x32xf32, #tpu.memory_space<vmem>>, %arg7: memref<2x1x32xf32, #tpu.memory_space<vmem>>, %arg8: memref<2x1x32xf32, #tpu.memory_space<vmem>>, %arg9: memref<2x1x32xf32, #tpu.memory_space<vmem>>, %arg10: memref<2x32x64xf32, #tpu.memory_space<vmem>>, %arg11: memref<2x1x64xf32, #tpu.memory_space<vmem>>, %arg12: memref<2x64x32xf32, #tpu.memory_space<vmem>>, %arg13: memref<2x1x32xf32, #tpu.memory_space<vmem>>, %arg14: memref<2x1x32xf32, #tpu.memory_space<vmem>>, %arg15: memref<2x1x32xf32, #tpu.memory_space<vmem>>, %arg16: memref<2x32xf32, #tpu.memory_space<vmem>>) attributes {dimension_semantics = [], scalar_prefetch = 0 : i64, scratch_operands = 0 : i64, tpu.core_type = #tpu.core_type<tc>} {
    %c0 = arith.constant 0 : index
    %c0_0 = arith.constant 0 : index
    %0 = vector.load %arg1[%c0, %c0_0] : memref<16x16xf32, #tpu.memory_space<vmem>>, vector<16x16xf32>
    %c0_1 = arith.constant 0 : index
    %c0_2 = arith.constant 0 : index
    %1 = vector.load %arg0[%c0_1, %c0_2] : memref<16x32xf32, #tpu.memory_space<vmem>>, vector<16x32xf32>
    %c0_3 = arith.constant 0 : index
    %c0_4 = arith.constant 0 : index
    %2 = vector.load %arg2[%c0_3, %c0_4] : memref<1x32xf32, #tpu.memory_space<vmem>>, vector<1x32xf32>
    %c0_5 = arith.constant 0 : index
    %c0_6 = arith.constant 0 : index
    %3 = vector.load %arg3[%c0_5, %c0_6] : memref<1x32xf32, #tpu.memory_space<vmem>>, vector<1x32xf32>
    %cst = arith.constant dense<0.000000e+00> : vector<16xf32>
    %4 = vector.multi_reduction <add>, %1, %cst [1] : vector<16x32xf32> to vector<16xf32>
    %5 = vector.shape_cast %4 : vector<16xf32> to vector<16x1xf32>
    %cst_7 = arith.constant 3.200000e+01 : f32
    %6 = vector.broadcast %cst_7 : f32 to vector<16x1xf32>
    %7 = arith.divf %5, %6 : vector<16x1xf32>
    %8 = vector.broadcast %7 : vector<16x1xf32> to vector<16x32xf32>
    %9 = arith.subf %1, %8 : vector<16x32xf32>
    %10 = arith.mulf %9, %9 : vector<16x32xf32>
    %cst_8 = arith.constant dense<0.000000e+00> : vector<16xf32>
    %11 = vector.multi_reduction <add>, %10, %cst_8 [1] : vector<16x32xf32> to vector<16xf32>
    %12 = vector.shape_cast %11 : vector<16xf32> to vector<16x1xf32>
    %cst_9 = arith.constant 3.200000e+01 : f32
    %13 = vector.broadcast %cst_9 : f32 to vector<16x1xf32>
    %14 = arith.divf %12, %13 : vector<16x1xf32>
    %cst_10 = arith.constant 9.99999996E-13 : f32
    %15 = vector.broadcast %cst_10 : f32 to vector<16x1xf32>
    %16 = arith.addf %14, %15 : vector<16x1xf32>
    %17 = math.rsqrt %16 : vector<16x1xf32>
    %18 = vector.broadcast %7 : vector<16x1xf32> to vector<16x32xf32>
    %19 = arith.subf %1, %18 : vector<16x32xf32>
    %20 = vector.broadcast %17 : vector<16x1xf32> to vector<16x32xf32>
    %21 = arith.mulf %19, %20 : vector<16x32xf32>
    %22 = vector.broadcast %2 : vector<1x32xf32> to vector<16x32xf32>
    %23 = arith.mulf %21, %22 : vector<16x32xf32>
    %24 = vector.broadcast %3 : vector<1x32xf32> to vector<16x32xf32>
    %25 = arith.addf %23, %24 : vector<16x32xf32>
    %c0_11 = arith.constant 0 : index
    %c0_12 = arith.constant 0 : index
    %c0_13 = arith.constant 0 : index
    %26 = vector.load %arg4[%c0_11, %c0_12, %c0_13] : memref<2x32x96xf32, #tpu.memory_space<vmem>>, vector<1x32x96xf32>
    %27 = vector.shape_cast %26 : vector<1x32x96xf32> to vector<32x96xf32>
    %cst_14 = arith.constant dense<0.000000e+00> : vector<16x96xf32>
    %28 = tpu.matmul %25, %27, %cst_14 {dimension_numbers = #tpu.dot_dimension_numbers<[1], [0], [0], [1], [0, 0, 1, 1], [], []>} : vector<16x32xf32>, vector<32x96xf32>, vector<16x96xf32> -> vector<16x96xf32>
    %c0_15 = arith.constant 0 : index
    %c0_16 = arith.constant 0 : index
    %c0_17 = arith.constant 0 : index
    %29 = vector.load %arg5[%c0_15, %c0_16, %c0_17] : memref<2x1x96xf32, #tpu.memory_space<vmem>>, vector<1x1x96xf32>
    %30 = vector.shape_cast %29 : vector<1x1x96xf32> to vector<1x96xf32>
    %31 = vector.broadcast %30 : vector<1x96xf32> to vector<16x96xf32>
    %32 = arith.addf %28, %31 : vector<16x96xf32>
    %33 = vector.extract_strided_slice %32 {offsets = [0, 0], sizes = [16, 8], strides = [1, 1]} : vector<16x96xf32> to vector<16x8xf32>
    %34 = vector.extract_strided_slice %32 {offsets = [0, 32], sizes = [16, 8], strides = [1, 1]} : vector<16x96xf32> to vector<16x8xf32>
    %35 = vector.extract_strided_slice %32 {offsets = [0, 64], sizes = [16, 8], strides = [1, 1]} : vector<16x96xf32> to vector<16x8xf32>
    %cst_18 = arith.constant dense<0.000000e+00> : vector<16x16xf32>
    %36 = tpu.matmul %33, %34, %cst_18 {dimension_numbers = #tpu.dot_dimension_numbers<[1], [1], [0], [0], [0, 0, 1, 0], [], []>} : vector<16x8xf32>, vector<16x8xf32>, vector<16x16xf32> -> vector<16x16xf32>
    %cst_19 = arith.constant 0.353553385 : f32
    %37 = vector.broadcast %cst_19 : f32 to vector<16x16xf32>
    %38 = arith.mulf %36, %37 : vector<16x16xf32>
    %39 = arith.addf %38, %0 : vector<16x16xf32>
    %cst_20 = arith.constant dense<0xFF800000> : vector<16xf32>
    %40 = vector.multi_reduction <maximumf>, %39, %cst_20 [1] : vector<16x16xf32> to vector<16xf32>
    %41 = vector.shape_cast %40 : vector<16xf32> to vector<16x1xf32>
    %42 = vector.broadcast %41 : vector<16x1xf32> to vector<16x16xf32>
    %43 = arith.subf %39, %42 : vector<16x16xf32>
    %44 = math.exp %43 : vector<16x16xf32>
    %cst_21 = arith.constant dense<0.000000e+00> : vector<16xf32>
    %45 = vector.multi_reduction <add>, %44, %cst_21 [1] : vector<16x16xf32> to vector<16xf32>
    %46 = vector.shape_cast %45 : vector<16xf32> to vector<16x1xf32>
    %47 = tpu.reciprocal %46 {approx = true} : vector<16x1xf32> -> vector<16x1xf32>
    %48 = vector.broadcast %47 : vector<16x1xf32> to vector<16x16xf32>
    %49 = arith.mulf %44, %48 : vector<16x16xf32>
    %cst_22 = arith.constant dense<0.000000e+00> : vector<16x8xf32>
    %50 = tpu.matmul %49, %35, %cst_22 {dimension_numbers = #tpu.dot_dimension_numbers<[1], [0], [0], [1], [0, 0, 1, 1], [], []>} : vector<16x16xf32>, vector<16x8xf32>, vector<16x8xf32> -> vector<16x8xf32>
    %c0_23 = arith.constant 0 : index
    %c0_24 = arith.constant 0 : index
    %c0_25 = arith.constant 0 : index
    %c0_26 = arith.constant 0 : index
    %51 = vector.load %arg6[%c0_23, %c0_24, %c0_25, %c0_26] : memref<2x4x8x32xf32, #tpu.memory_space<vmem>>, vector<1x1x8x32xf32>
    %52 = vector.shape_cast %51 : vector<1x1x8x32xf32> to vector<8x32xf32>
    %cst_27 = arith.constant dense<0.000000e+00> : vector<16x32xf32>
    %53 = tpu.matmul %50, %52, %cst_27 {dimension_numbers = #tpu.dot_dimension_numbers<[1], [0], [0], [1], [0, 0, 1, 1], [], []>} : vector<16x8xf32>, vector<8x32xf32>, vector<16x32xf32> -> vector<16x32xf32>
    %54 = vector.extract_strided_slice %32 {offsets = [0, 8], sizes = [16, 8], strides = [1, 1]} : vector<16x96xf32> to vector<16x8xf32>
    %55 = vector.extract_strided_slice %32 {offsets = [0, 40], sizes = [16, 8], strides = [1, 1]} : vector<16x96xf32> to vector<16x8xf32>
    %56 = vector.extract_strided_slice %32 {offsets = [0, 72], sizes = [16, 8], strides = [1, 1]} : vector<16x96xf32> to vector<16x8xf32>
    %cst_28 = arith.constant dense<0.000000e+00> : vector<16x16xf32>
    %57 = tpu.matmul %54, %55, %cst_28 {dimension_numbers = #tpu.dot_dimension_numbers<[1], [1], [0], [0], [0, 0, 1, 0], [], []>} : vector<16x8xf32>, vector<16x8xf32>, vector<16x16xf32> -> vector<16x16xf32>
    %cst_29 = arith.constant 0.353553385 : f32
    %58 = vector.broadcast %cst_29 : f32 to vector<16x16xf32>
    %59 = arith.mulf %57, %58 : vector<16x16xf32>
    %60 = arith.addf %59, %0 : vector<16x16xf32>
    %cst_30 = arith.constant dense<0xFF800000> : vector<16xf32>
    %61 = vector.multi_reduction <maximumf>, %60, %cst_30 [1] : vector<16x16xf32> to vector<16xf32>
    %62 = vector.shape_cast %61 : vector<16xf32> to vector<16x1xf32>
    %63 = vector.broadcast %62 : vector<16x1xf32> to vector<16x16xf32>
    %64 = arith.subf %60, %63 : vector<16x16xf32>
    %65 = math.exp %64 : vector<16x16xf32>
    %cst_31 = arith.constant dense<0.000000e+00> : vector<16xf32>
    %66 = vector.multi_reduction <add>, %65, %cst_31 [1] : vector<16x16xf32> to vector<16xf32>
    %67 = vector.shape_cast %66 : vector<16xf32> to vector<16x1xf32>
    %68 = tpu.reciprocal %67 {approx = true} : vector<16x1xf32> -> vector<16x1xf32>
    %69 = vector.broadcast %68 : vector<16x1xf32> to vector<16x16xf32>
    %70 = arith.mulf %65, %69 : vector<16x16xf32>
    %cst_32 = arith.constant dense<0.000000e+00> : vector<16x8xf32>
    %71 = tpu.matmul %70, %56, %cst_32 {dimension_numbers = #tpu.dot_dimension_numbers<[1], [0], [0], [1], [0, 0, 1, 1], [], []>} : vector<16x16xf32>, vector<16x8xf32>, vector<16x8xf32> -> vector<16x8xf32>
    %c0_33 = arith.constant 0 : index
    %c1 = arith.constant 1 : index
    %c0_34 = arith.constant 0 : index
    %c0_35 = arith.constant 0 : index
    %72 = vector.load %arg6[%c0_33, %c1, %c0_34, %c0_35] : memref<2x4x8x32xf32, #tpu.memory_space<vmem>>, vector<1x1x8x32xf32>
    %73 = vector.shape_cast %72 : vector<1x1x8x32xf32> to vector<8x32xf32>
    %cst_36 = arith.constant dense<0.000000e+00> : vector<16x32xf32>
    %74 = tpu.matmul %71, %73, %cst_36 {dimension_numbers = #tpu.dot_dimension_numbers<[1], [0], [0], [1], [0, 0, 1, 1], [], []>} : vector<16x8xf32>, vector<8x32xf32>, vector<16x32xf32> -> vector<16x32xf32>
    %75 = arith.addf %53, %74 : vector<16x32xf32>
    %76 = vector.extract_strided_slice %32 {offsets = [0, 16], sizes = [16, 8], strides = [1, 1]} : vector<16x96xf32> to vector<16x8xf32>
    %77 = vector.extract_strided_slice %32 {offsets = [0, 48], sizes = [16, 8], strides = [1, 1]} : vector<16x96xf32> to vector<16x8xf32>
    %78 = vector.extract_strided_slice %32 {offsets = [0, 80], sizes = [16, 8], strides = [1, 1]} : vector<16x96xf32> to vector<16x8xf32>
    %cst_37 = arith.constant dense<0.000000e+00> : vector<16x16xf32>
    %79 = tpu.matmul %76, %77, %cst_37 {dimension_numbers = #tpu.dot_dimension_numbers<[1], [1], [0], [0], [0, 0, 1, 0], [], []>} : vector<16x8xf32>, vector<16x8xf32>, vector<16x16xf32> -> vector<16x16xf32>
    %cst_38 = arith.constant 0.353553385 : f32
    %80 = vector.broadcast %cst_38 : f32 to vector<16x16xf32>
    %81 = arith.mulf %79, %80 : vector<16x16xf32>
    %82 = arith.addf %81, %0 : vector<16x16xf32>
    %cst_39 = arith.constant dense<0xFF800000> : vector<16xf32>
    %83 = vector.multi_reduction <maximumf>, %82, %cst_39 [1] : vector<16x16xf32> to vector<16xf32>
    %84 = vector.shape_cast %83 : vector<16xf32> to vector<16x1xf32>
    %85 = vector.broadcast %84 : vector<16x1xf32> to vector<16x16xf32>
    %86 = arith.subf %82, %85 : vector<16x16xf32>
    %87 = math.exp %86 : vector<16x16xf32>
    %cst_40 = arith.constant dense<0.000000e+00> : vector<16xf32>
    %88 = vector.multi_reduction <add>, %87, %cst_40 [1] : vector<16x16xf32> to vector<16xf32>
    %89 = vector.shape_cast %88 : vector<16xf32> to vector<16x1xf32>
    %90 = tpu.reciprocal %89 {approx = true} : vector<16x1xf32> -> vector<16x1xf32>
    %91 = vector.broadcast %90 : vector<16x1xf32> to vector<16x16xf32>
    %92 = arith.mulf %87, %91 : vector<16x16xf32>
    %cst_41 = arith.constant dense<0.000000e+00> : vector<16x8xf32>
    %93 = tpu.matmul %92, %78, %cst_41 {dimension_numbers = #tpu.dot_dimension_numbers<[1], [0], [0], [1], [0, 0, 1, 1], [], []>} : vector<16x16xf32>, vector<16x8xf32>, vector<16x8xf32> -> vector<16x8xf32>
    %c0_42 = arith.constant 0 : index
    %c2 = arith.constant 2 : index
    %c0_43 = arith.constant 0 : index
    %c0_44 = arith.constant 0 : index
    %94 = vector.load %arg6[%c0_42, %c2, %c0_43, %c0_44] : memref<2x4x8x32xf32, #tpu.memory_space<vmem>>, vector<1x1x8x32xf32>
    %95 = vector.shape_cast %94 : vector<1x1x8x32xf32> to vector<8x32xf32>
    %cst_45 = arith.constant dense<0.000000e+00> : vector<16x32xf32>
    %96 = tpu.matmul %93, %95, %cst_45 {dimension_numbers = #tpu.dot_dimension_numbers<[1], [0], [0], [1], [0, 0, 1, 1], [], []>} : vector<16x8xf32>, vector<8x32xf32>, vector<16x32xf32> -> vector<16x32xf32>
    %97 = arith.addf %75, %96 : vector<16x32xf32>
    %98 = vector.extract_strided_slice %32 {offsets = [0, 24], sizes = [16, 8], strides = [1, 1]} : vector<16x96xf32> to vector<16x8xf32>
    %99 = vector.extract_strided_slice %32 {offsets = [0, 56], sizes = [16, 8], strides = [1, 1]} : vector<16x96xf32> to vector<16x8xf32>
    %100 = vector.extract_strided_slice %32 {offsets = [0, 88], sizes = [16, 8], strides = [1, 1]} : vector<16x96xf32> to vector<16x8xf32>
    %cst_46 = arith.constant dense<0.000000e+00> : vector<16x16xf32>
    %101 = tpu.matmul %98, %99, %cst_46 {dimension_numbers = #tpu.dot_dimension_numbers<[1], [1], [0], [0], [0, 0, 1, 0], [], []>} : vector<16x8xf32>, vector<16x8xf32>, vector<16x16xf32> -> vector<16x16xf32>
    %cst_47 = arith.constant 0.353553385 : f32
    %102 = vector.broadcast %cst_47 : f32 to vector<16x16xf32>
    %103 = arith.mulf %101, %102 : vector<16x16xf32>
    %104 = arith.addf %103, %0 : vector<16x16xf32>
    %cst_48 = arith.constant dense<0xFF800000> : vector<16xf32>
    %105 = vector.multi_reduction <maximumf>, %104, %cst_48 [1] : vector<16x16xf32> to vector<16xf32>
    %106 = vector.shape_cast %105 : vector<16xf32> to vector<16x1xf32>
    %107 = vector.broadcast %106 : vector<16x1xf32> to vector<16x16xf32>
    %108 = arith.subf %104, %107 : vector<16x16xf32>
    %109 = math.exp %108 : vector<16x16xf32>
    %cst_49 = arith.constant dense<0.000000e+00> : vector<16xf32>
    %110 = vector.multi_reduction <add>, %109, %cst_49 [1] : vector<16x16xf32> to vector<16xf32>
    %111 = vector.shape_cast %110 : vector<16xf32> to vector<16x1xf32>
    %112 = tpu.reciprocal %111 {approx = true} : vector<16x1xf32> -> vector<16x1xf32>
    %113 = vector.broadcast %112 : vector<16x1xf32> to vector<16x16xf32>
    %114 = arith.mulf %109, %113 : vector<16x16xf32>
    %cst_50 = arith.constant dense<0.000000e+00> : vector<16x8xf32>
    %115 = tpu.matmul %114, %100, %cst_50 {dimension_numbers = #tpu.dot_dimension_numbers<[1], [0], [0], [1], [0, 0, 1, 1], [], []>} : vector<16x16xf32>, vector<16x8xf32>, vector<16x8xf32> -> vector<16x8xf32>
    %c0_51 = arith.constant 0 : index
    %c3 = arith.constant 3 : index
    %c0_52 = arith.constant 0 : index
    %c0_53 = arith.constant 0 : index
    %116 = vector.load %arg6[%c0_51, %c3, %c0_52, %c0_53] : memref<2x4x8x32xf32, #tpu.memory_space<vmem>>, vector<1x1x8x32xf32>
    %117 = vector.shape_cast %116 : vector<1x1x8x32xf32> to vector<8x32xf32>
    %cst_54 = arith.constant dense<0.000000e+00> : vector<16x32xf32>
    %118 = tpu.matmul %115, %117, %cst_54 {dimension_numbers = #tpu.dot_dimension_numbers<[1], [0], [0], [1], [0, 0, 1, 1], [], []>} : vector<16x8xf32>, vector<8x32xf32>, vector<16x32xf32> -> vector<16x32xf32>
    %119 = arith.addf %97, %118 : vector<16x32xf32>
    %c0_55 = arith.constant 0 : index
    %c0_56 = arith.constant 0 : index
    %c0_57 = arith.constant 0 : index
    %120 = vector.load %arg7[%c0_55, %c0_56, %c0_57] : memref<2x1x32xf32, #tpu.memory_space<vmem>>, vector<1x1x32xf32>
    %121 = vector.shape_cast %120 : vector<1x1x32xf32> to vector<1x32xf32>
    %122 = vector.broadcast %121 : vector<1x32xf32> to vector<16x32xf32>
    %123 = arith.addf %119, %122 : vector<16x32xf32>
    %124 = arith.addf %123, %25 : vector<16x32xf32>
    %c0_58 = arith.constant 0 : index
    %c0_59 = arith.constant 0 : index
    %c0_60 = arith.constant 0 : index
    %125 = vector.load %arg8[%c0_58, %c0_59, %c0_60] : memref<2x1x32xf32, #tpu.memory_space<vmem>>, vector<1x1x32xf32>
    %126 = vector.shape_cast %125 : vector<1x1x32xf32> to vector<1x32xf32>
    %c0_61 = arith.constant 0 : index
    %c0_62 = arith.constant 0 : index
    %c0_63 = arith.constant 0 : index
    %127 = vector.load %arg9[%c0_61, %c0_62, %c0_63] : memref<2x1x32xf32, #tpu.memory_space<vmem>>, vector<1x1x32xf32>
    %128 = vector.shape_cast %127 : vector<1x1x32xf32> to vector<1x32xf32>
    %cst_64 = arith.constant dense<0.000000e+00> : vector<16xf32>
    %129 = vector.multi_reduction <add>, %124, %cst_64 [1] : vector<16x32xf32> to vector<16xf32>
    %130 = vector.shape_cast %129 : vector<16xf32> to vector<16x1xf32>
    %cst_65 = arith.constant 3.200000e+01 : f32
    %131 = vector.broadcast %cst_65 : f32 to vector<16x1xf32>
    %132 = arith.divf %130, %131 : vector<16x1xf32>
    %133 = vector.broadcast %132 : vector<16x1xf32> to vector<16x32xf32>
    %134 = arith.subf %124, %133 : vector<16x32xf32>
    %135 = arith.mulf %134, %134 : vector<16x32xf32>
    %cst_66 = arith.constant dense<0.000000e+00> : vector<16xf32>
    %136 = vector.multi_reduction <add>, %135, %cst_66 [1] : vector<16x32xf32> to vector<16xf32>
    %137 = vector.shape_cast %136 : vector<16xf32> to vector<16x1xf32>
    %cst_67 = arith.constant 3.200000e+01 : f32
    %138 = vector.broadcast %cst_67 : f32 to vector<16x1xf32>
    %139 = arith.divf %137, %138 : vector<16x1xf32>
    %cst_68 = arith.constant 9.99999996E-13 : f32
    %140 = vector.broadcast %cst_68 : f32 to vector<16x1xf32>
    %141 = arith.addf %139, %140 : vector<16x1xf32>
    %142 = math.rsqrt %141 : vector<16x1xf32>
    %143 = vector.broadcast %132 : vector<16x1xf32> to vector<16x32xf32>
    %144 = arith.subf %124, %143 : vector<16x32xf32>
    %145 = vector.broadcast %142 : vector<16x1xf32> to vector<16x32xf32>
    %146 = arith.mulf %144, %145 : vector<16x32xf32>
    %147 = vector.broadcast %126 : vector<1x32xf32> to vector<16x32xf32>
    %148 = arith.mulf %146, %147 : vector<16x32xf32>
    %149 = vector.broadcast %128 : vector<1x32xf32> to vector<16x32xf32>
    %150 = arith.addf %148, %149 : vector<16x32xf32>
    %c0_69 = arith.constant 0 : index
    %c0_70 = arith.constant 0 : index
    %c0_71 = arith.constant 0 : index
    %151 = vector.load %arg10[%c0_69, %c0_70, %c0_71] : memref<2x32x64xf32, #tpu.memory_space<vmem>>, vector<1x32x64xf32>
    %152 = vector.shape_cast %151 : vector<1x32x64xf32> to vector<32x64xf32>
    %cst_72 = arith.constant dense<0.000000e+00> : vector<16x64xf32>
    %153 = tpu.matmul %150, %152, %cst_72 {dimension_numbers = #tpu.dot_dimension_numbers<[1], [0], [0], [1], [0, 0, 1, 1], [], []>} : vector<16x32xf32>, vector<32x64xf32>, vector<16x64xf32> -> vector<16x64xf32>
    %c0_73 = arith.constant 0 : index
    %c0_74 = arith.constant 0 : index
    %c0_75 = arith.constant 0 : index
    %154 = vector.load %arg11[%c0_73, %c0_74, %c0_75] : memref<2x1x64xf32, #tpu.memory_space<vmem>>, vector<1x1x64xf32>
    %155 = vector.shape_cast %154 : vector<1x1x64xf32> to vector<1x64xf32>
    %156 = vector.broadcast %155 : vector<1x64xf32> to vector<16x64xf32>
    %157 = arith.addf %153, %156 : vector<16x64xf32>
    %158 = arith.mulf %157, %157 : vector<16x64xf32>
    %159 = arith.mulf %157, %158 : vector<16x64xf32>
    %cst_76 = arith.constant 4.471500e-02 : f32
    %160 = vector.broadcast %cst_76 : f32 to vector<16x64xf32>
    %161 = arith.mulf %160, %159 : vector<16x64xf32>
    %162 = arith.addf %157, %161 : vector<16x64xf32>
    %cst_77 = arith.constant 0.797884583 : f32
    %163 = vector.broadcast %cst_77 : f32 to vector<16x64xf32>
    %164 = arith.mulf %163, %162 : vector<16x64xf32>
    %165 = math.tanh %164 : vector<16x64xf32>
    %cst_78 = arith.constant 1.000000e+00 : f32
    %166 = vector.broadcast %cst_78 : f32 to vector<16x64xf32>
    %167 = arith.addf %166, %165 : vector<16x64xf32>
    %cst_79 = arith.constant 5.000000e-01 : f32
    %168 = vector.broadcast %cst_79 : f32 to vector<16x64xf32>
    %169 = arith.mulf %168, %167 : vector<16x64xf32>
    %170 = arith.mulf %157, %169 : vector<16x64xf32>
    %c0_80 = arith.constant 0 : index
    %c0_81 = arith.constant 0 : index
    %c0_82 = arith.constant 0 : index
    %171 = vector.load %arg12[%c0_80, %c0_81, %c0_82] : memref<2x64x32xf32, #tpu.memory_space<vmem>>, vector<1x64x32xf32>
    %172 = vector.shape_cast %171 : vector<1x64x32xf32> to vector<64x32xf32>
    %cst_83 = arith.constant dense<0.000000e+00> : vector<16x32xf32>
    %173 = tpu.matmul %170, %172, %cst_83 {dimension_numbers = #tpu.dot_dimension_numbers<[1], [0], [0], [1], [0, 0, 1, 1], [], []>} : vector<16x64xf32>, vector<64x32xf32>, vector<16x32xf32> -> vector<16x32xf32>
    %c0_84 = arith.constant 0 : index
    %c0_85 = arith.constant 0 : index
    %c0_86 = arith.constant 0 : index
    %174 = vector.load %arg13[%c0_84, %c0_85, %c0_86] : memref<2x1x32xf32, #tpu.memory_space<vmem>>, vector<1x1x32xf32>
    %175 = vector.shape_cast %174 : vector<1x1x32xf32> to vector<1x32xf32>
    %176 = vector.broadcast %175 : vector<1x32xf32> to vector<16x32xf32>
    %177 = arith.addf %173, %176 : vector<16x32xf32>
    %178 = arith.addf %177, %150 : vector<16x32xf32>
    %c0_87 = arith.constant 0 : index
    %c0_88 = arith.constant 0 : index
    %c0_89 = arith.constant 0 : index
    %179 = vector.load %arg14[%c0_87, %c0_88, %c0_89] : memref<2x1x32xf32, #tpu.memory_space<vmem>>, vector<1x1x32xf32>
    %180 = vector.shape_cast %179 : vector<1x1x32xf32> to vector<1x32xf32>
    %c0_90 = arith.constant 0 : index
    %c0_91 = arith.constant 0 : index
    %c0_92 = arith.constant 0 : index
    %181 = vector.load %arg15[%c0_90, %c0_91, %c0_92] : memref<2x1x32xf32, #tpu.memory_space<vmem>>, vector<1x1x32xf32>
    %182 = vector.shape_cast %181 : vector<1x1x32xf32> to vector<1x32xf32>
    %cst_93 = arith.constant dense<0.000000e+00> : vector<16xf32>
    %183 = vector.multi_reduction <add>, %178, %cst_93 [1] : vector<16x32xf32> to vector<16xf32>
    %184 = vector.shape_cast %183 : vector<16xf32> to vector<16x1xf32>
    %cst_94 = arith.constant 3.200000e+01 : f32
    %185 = vector.broadcast %cst_94 : f32 to vector<16x1xf32>
    %186 = arith.divf %184, %185 : vector<16x1xf32>
    %187 = vector.broadcast %186 : vector<16x1xf32> to vector<16x32xf32>
    %188 = arith.subf %178, %187 : vector<16x32xf32>
    %189 = arith.mulf %188, %188 : vector<16x32xf32>
    %cst_95 = arith.constant dense<0.000000e+00> : vector<16xf32>
    %190 = vector.multi_reduction <add>, %189, %cst_95 [1] : vector<16x32xf32> to vector<16xf32>
    %191 = vector.shape_cast %190 : vector<16xf32> to vector<16x1xf32>
    %cst_96 = arith.constant 3.200000e+01 : f32
    %192 = vector.broadcast %cst_96 : f32 to vector<16x1xf32>
    %193 = arith.divf %191, %192 : vector<16x1xf32>
    %cst_97 = arith.constant 9.99999996E-13 : f32
    %194 = vector.broadcast %cst_97 : f32 to vector<16x1xf32>
    %195 = arith.addf %193, %194 : vector<16x1xf32>
    %196 = math.rsqrt %195 : vector<16x1xf32>
    %197 = vector.broadcast %186 : vector<16x1xf32> to vector<16x32xf32>
    %198 = arith.subf %178, %197 : vector<16x32xf32>
    %199 = vector.broadcast %196 : vector<16x1xf32> to vector<16x32xf32>
    %200 = arith.mulf %198, %199 : vector<16x32xf32>
    %201 = vector.broadcast %180 : vector<1x32xf32> to vector<16x32xf32>
    %202 = arith.mulf %200, %201 : vector<16x32xf32>
    %203 = vector.broadcast %182 : vector<1x32xf32> to vector<16x32xf32>
    %204 = arith.addf %202, %203 : vector<16x32xf32>
    %c1_98 = arith.constant 1 : index
    %c0_99 = arith.constant 0 : index
    %c0_100 = arith.constant 0 : index
    %205 = vector.load %arg4[%c1_98, %c0_99, %c0_100] : memref<2x32x96xf32, #tpu.memory_space<vmem>>, vector<1x32x96xf32>
    %206 = vector.shape_cast %205 : vector<1x32x96xf32> to vector<32x96xf32>
    %cst_101 = arith.constant dense<0.000000e+00> : vector<16x96xf32>
    %207 = tpu.matmul %204, %206, %cst_101 {dimension_numbers = #tpu.dot_dimension_numbers<[1], [0], [0], [1], [0, 0, 1, 1], [], []>} : vector<16x32xf32>, vector<32x96xf32>, vector<16x96xf32> -> vector<16x96xf32>
    %c1_102 = arith.constant 1 : index
    %c0_103 = arith.constant 0 : index
    %c0_104 = arith.constant 0 : index
    %208 = vector.load %arg5[%c1_102, %c0_103, %c0_104] : memref<2x1x96xf32, #tpu.memory_space<vmem>>, vector<1x1x96xf32>
    %209 = vector.shape_cast %208 : vector<1x1x96xf32> to vector<1x96xf32>
    %210 = vector.broadcast %209 : vector<1x96xf32> to vector<16x96xf32>
    %211 = arith.addf %207, %210 : vector<16x96xf32>
    %212 = vector.extract_strided_slice %211 {offsets = [0, 0], sizes = [16, 8], strides = [1, 1]} : vector<16x96xf32> to vector<16x8xf32>
    %213 = vector.extract_strided_slice %211 {offsets = [0, 32], sizes = [16, 8], strides = [1, 1]} : vector<16x96xf32> to vector<16x8xf32>
    %214 = vector.extract_strided_slice %211 {offsets = [0, 64], sizes = [16, 8], strides = [1, 1]} : vector<16x96xf32> to vector<16x8xf32>
    %cst_105 = arith.constant dense<0.000000e+00> : vector<16x16xf32>
    %215 = tpu.matmul %212, %213, %cst_105 {dimension_numbers = #tpu.dot_dimension_numbers<[1], [1], [0], [0], [0, 0, 1, 0], [], []>} : vector<16x8xf32>, vector<16x8xf32>, vector<16x16xf32> -> vector<16x16xf32>
    %cst_106 = arith.constant 0.353553385 : f32
    %216 = vector.broadcast %cst_106 : f32 to vector<16x16xf32>
    %217 = arith.mulf %215, %216 : vector<16x16xf32>
    %218 = arith.addf %217, %0 : vector<16x16xf32>
    %cst_107 = arith.constant dense<0xFF800000> : vector<16xf32>
    %219 = vector.multi_reduction <maximumf>, %218, %cst_107 [1] : vector<16x16xf32> to vector<16xf32>
    %220 = vector.shape_cast %219 : vector<16xf32> to vector<16x1xf32>
    %221 = vector.broadcast %220 : vector<16x1xf32> to vector<16x16xf32>
    %222 = arith.subf %218, %221 : vector<16x16xf32>
    %223 = math.exp %222 : vector<16x16xf32>
    %cst_108 = arith.constant dense<0.000000e+00> : vector<16xf32>
    %224 = vector.multi_reduction <add>, %223, %cst_108 [1] : vector<16x16xf32> to vector<16xf32>
    %225 = vector.shape_cast %224 : vector<16xf32> to vector<16x1xf32>
    %226 = tpu.reciprocal %225 {approx = true} : vector<16x1xf32> -> vector<16x1xf32>
    %227 = vector.broadcast %226 : vector<16x1xf32> to vector<16x16xf32>
    %228 = arith.mulf %223, %227 : vector<16x16xf32>
    %cst_109 = arith.constant dense<0.000000e+00> : vector<16x8xf32>
    %229 = tpu.matmul %228, %214, %cst_109 {dimension_numbers = #tpu.dot_dimension_numbers<[1], [0], [0], [1], [0, 0, 1, 1], [], []>} : vector<16x16xf32>, vector<16x8xf32>, vector<16x8xf32> -> vector<16x8xf32>
    %c1_110 = arith.constant 1 : index
    %c0_111 = arith.constant 0 : index
    %c0_112 = arith.constant 0 : index
    %c0_113 = arith.constant 0 : index
    %230 = vector.load %arg6[%c1_110, %c0_111, %c0_112, %c0_113] : memref<2x4x8x32xf32, #tpu.memory_space<vmem>>, vector<1x1x8x32xf32>
    %231 = vector.shape_cast %230 : vector<1x1x8x32xf32> to vector<8x32xf32>
    %cst_114 = arith.constant dense<0.000000e+00> : vector<16x32xf32>
    %232 = tpu.matmul %229, %231, %cst_114 {dimension_numbers = #tpu.dot_dimension_numbers<[1], [0], [0], [1], [0, 0, 1, 1], [], []>} : vector<16x8xf32>, vector<8x32xf32>, vector<16x32xf32> -> vector<16x32xf32>
    %233 = vector.extract_strided_slice %211 {offsets = [0, 8], sizes = [16, 8], strides = [1, 1]} : vector<16x96xf32> to vector<16x8xf32>
    %234 = vector.extract_strided_slice %211 {offsets = [0, 40], sizes = [16, 8], strides = [1, 1]} : vector<16x96xf32> to vector<16x8xf32>
    %235 = vector.extract_strided_slice %211 {offsets = [0, 72], sizes = [16, 8], strides = [1, 1]} : vector<16x96xf32> to vector<16x8xf32>
    %cst_115 = arith.constant dense<0.000000e+00> : vector<16x16xf32>
    %236 = tpu.matmul %233, %234, %cst_115 {dimension_numbers = #tpu.dot_dimension_numbers<[1], [1], [0], [0], [0, 0, 1, 0], [], []>} : vector<16x8xf32>, vector<16x8xf32>, vector<16x16xf32> -> vector<16x16xf32>
    %cst_116 = arith.constant 0.353553385 : f32
    %237 = vector.broadcast %cst_116 : f32 to vector<16x16xf32>
    %238 = arith.mulf %236, %237 : vector<16x16xf32>
    %239 = arith.addf %238, %0 : vector<16x16xf32>
    %cst_117 = arith.constant dense<0xFF800000> : vector<16xf32>
    %240 = vector.multi_reduction <maximumf>, %239, %cst_117 [1] : vector<16x16xf32> to vector<16xf32>
    %241 = vector.shape_cast %240 : vector<16xf32> to vector<16x1xf32>
    %242 = vector.broadcast %241 : vector<16x1xf32> to vector<16x16xf32>
    %243 = arith.subf %239, %242 : vector<16x16xf32>
    %244 = math.exp %243 : vector<16x16xf32>
    %cst_118 = arith.constant dense<0.000000e+00> : vector<16xf32>
    %245 = vector.multi_reduction <add>, %244, %cst_118 [1] : vector<16x16xf32> to vector<16xf32>
    %246 = vector.shape_cast %245 : vector<16xf32> to vector<16x1xf32>
    %247 = tpu.reciprocal %246 {approx = true} : vector<16x1xf32> -> vector<16x1xf32>
    %248 = vector.broadcast %247 : vector<16x1xf32> to vector<16x16xf32>
    %249 = arith.mulf %244, %248 : vector<16x16xf32>
    %cst_119 = arith.constant dense<0.000000e+00> : vector<16x8xf32>
    %250 = tpu.matmul %249, %235, %cst_119 {dimension_numbers = #tpu.dot_dimension_numbers<[1], [0], [0], [1], [0, 0, 1, 1], [], []>} : vector<16x16xf32>, vector<16x8xf32>, vector<16x8xf32> -> vector<16x8xf32>
    %c1_120 = arith.constant 1 : index
    %c1_121 = arith.constant 1 : index
    %c0_122 = arith.constant 0 : index
    %c0_123 = arith.constant 0 : index
    %251 = vector.load %arg6[%c1_120, %c1_121, %c0_122, %c0_123] : memref<2x4x8x32xf32, #tpu.memory_space<vmem>>, vector<1x1x8x32xf32>
    %252 = vector.shape_cast %251 : vector<1x1x8x32xf32> to vector<8x32xf32>
    %cst_124 = arith.constant dense<0.000000e+00> : vector<16x32xf32>
    %253 = tpu.matmul %250, %252, %cst_124 {dimension_numbers = #tpu.dot_dimension_numbers<[1], [0], [0], [1], [0, 0, 1, 1], [], []>} : vector<16x8xf32>, vector<8x32xf32>, vector<16x32xf32> -> vector<16x32xf32>
    %254 = arith.addf %232, %253 : vector<16x32xf32>
    %255 = vector.extract_strided_slice %211 {offsets = [0, 16], sizes = [16, 8], strides = [1, 1]} : vector<16x96xf32> to vector<16x8xf32>
    %256 = vector.extract_strided_slice %211 {offsets = [0, 48], sizes = [16, 8], strides = [1, 1]} : vector<16x96xf32> to vector<16x8xf32>
    %257 = vector.extract_strided_slice %211 {offsets = [0, 80], sizes = [16, 8], strides = [1, 1]} : vector<16x96xf32> to vector<16x8xf32>
    %cst_125 = arith.constant dense<0.000000e+00> : vector<16x16xf32>
    %258 = tpu.matmul %255, %256, %cst_125 {dimension_numbers = #tpu.dot_dimension_numbers<[1], [1], [0], [0], [0, 0, 1, 0], [], []>} : vector<16x8xf32>, vector<16x8xf32>, vector<16x16xf32> -> vector<16x16xf32>
    %cst_126 = arith.constant 0.353553385 : f32
    %259 = vector.broadcast %cst_126 : f32 to vector<16x16xf32>
    %260 = arith.mulf %258, %259 : vector<16x16xf32>
    %261 = arith.addf %260, %0 : vector<16x16xf32>
    %cst_127 = arith.constant dense<0xFF800000> : vector<16xf32>
    %262 = vector.multi_reduction <maximumf>, %261, %cst_127 [1] : vector<16x16xf32> to vector<16xf32>
    %263 = vector.shape_cast %262 : vector<16xf32> to vector<16x1xf32>
    %264 = vector.broadcast %263 : vector<16x1xf32> to vector<16x16xf32>
    %265 = arith.subf %261, %264 : vector<16x16xf32>
    %266 = math.exp %265 : vector<16x16xf32>
    %cst_128 = arith.constant dense<0.000000e+00> : vector<16xf32>
    %267 = vector.multi_reduction <add>, %266, %cst_128 [1] : vector<16x16xf32> to vector<16xf32>
    %268 = vector.shape_cast %267 : vector<16xf32> to vector<16x1xf32>
    %269 = tpu.reciprocal %268 {approx = true} : vector<16x1xf32> -> vector<16x1xf32>
    %270 = vector.broadcast %269 : vector<16x1xf32> to vector<16x16xf32>
    %271 = arith.mulf %266, %270 : vector<16x16xf32>
    %cst_129 = arith.constant dense<0.000000e+00> : vector<16x8xf32>
    %272 = tpu.matmul %271, %257, %cst_129 {dimension_numbers = #tpu.dot_dimension_numbers<[1], [0], [0], [1], [0, 0, 1, 1], [], []>} : vector<16x16xf32>, vector<16x8xf32>, vector<16x8xf32> -> vector<16x8xf32>
    %c1_130 = arith.constant 1 : index
    %c2_131 = arith.constant 2 : index
    %c0_132 = arith.constant 0 : index
    %c0_133 = arith.constant 0 : index
    %273 = vector.load %arg6[%c1_130, %c2_131, %c0_132, %c0_133] : memref<2x4x8x32xf32, #tpu.memory_space<vmem>>, vector<1x1x8x32xf32>
    %274 = vector.shape_cast %273 : vector<1x1x8x32xf32> to vector<8x32xf32>
    %cst_134 = arith.constant dense<0.000000e+00> : vector<16x32xf32>
    %275 = tpu.matmul %272, %274, %cst_134 {dimension_numbers = #tpu.dot_dimension_numbers<[1], [0], [0], [1], [0, 0, 1, 1], [], []>} : vector<16x8xf32>, vector<8x32xf32>, vector<16x32xf32> -> vector<16x32xf32>
    %276 = arith.addf %254, %275 : vector<16x32xf32>
    %277 = vector.extract_strided_slice %211 {offsets = [0, 24], sizes = [16, 8], strides = [1, 1]} : vector<16x96xf32> to vector<16x8xf32>
    %278 = vector.extract_strided_slice %211 {offsets = [0, 56], sizes = [16, 8], strides = [1, 1]} : vector<16x96xf32> to vector<16x8xf32>
    %279 = vector.extract_strided_slice %211 {offsets = [0, 88], sizes = [16, 8], strides = [1, 1]} : vector<16x96xf32> to vector<16x8xf32>
    %cst_135 = arith.constant dense<0.000000e+00> : vector<16x16xf32>
    %280 = tpu.matmul %277, %278, %cst_135 {dimension_numbers = #tpu.dot_dimension_numbers<[1], [1], [0], [0], [0, 0, 1, 0], [], []>} : vector<16x8xf32>, vector<16x8xf32>, vector<16x16xf32> -> vector<16x16xf32>
    %cst_136 = arith.constant 0.353553385 : f32
    %281 = vector.broadcast %cst_136 : f32 to vector<16x16xf32>
    %282 = arith.mulf %280, %281 : vector<16x16xf32>
    %283 = arith.addf %282, %0 : vector<16x16xf32>
    %cst_137 = arith.constant dense<0xFF800000> : vector<16xf32>
    %284 = vector.multi_reduction <maximumf>, %283, %cst_137 [1] : vector<16x16xf32> to vector<16xf32>
    %285 = vector.shape_cast %284 : vector<16xf32> to vector<16x1xf32>
    %286 = vector.broadcast %285 : vector<16x1xf32> to vector<16x16xf32>
    %287 = arith.subf %283, %286 : vector<16x16xf32>
    %288 = math.exp %287 : vector<16x16xf32>
    %cst_138 = arith.constant dense<0.000000e+00> : vector<16xf32>
    %289 = vector.multi_reduction <add>, %288, %cst_138 [1] : vector<16x16xf32> to vector<16xf32>
    %290 = vector.shape_cast %289 : vector<16xf32> to vector<16x1xf32>
    %291 = tpu.reciprocal %290 {approx = true} : vector<16x1xf32> -> vector<16x1xf32>
    %292 = vector.broadcast %291 : vector<16x1xf32> to vector<16x16xf32>
    %293 = arith.mulf %288, %292 : vector<16x16xf32>
    %cst_139 = arith.constant dense<0.000000e+00> : vector<16x8xf32>
    %294 = tpu.matmul %293, %279, %cst_139 {dimension_numbers = #tpu.dot_dimension_numbers<[1], [0], [0], [1], [0, 0, 1, 1], [], []>} : vector<16x16xf32>, vector<16x8xf32>, vector<16x8xf32> -> vector<16x8xf32>
    %c1_140 = arith.constant 1 : index
    %c3_141 = arith.constant 3 : index
    %c0_142 = arith.constant 0 : index
    %c0_143 = arith.constant 0 : index
    %295 = vector.load %arg6[%c1_140, %c3_141, %c0_142, %c0_143] : memref<2x4x8x32xf32, #tpu.memory_space<vmem>>, vector<1x1x8x32xf32>
    %296 = vector.shape_cast %295 : vector<1x1x8x32xf32> to vector<8x32xf32>
    %cst_144 = arith.constant dense<0.000000e+00> : vector<16x32xf32>
    %297 = tpu.matmul %294, %296, %cst_144 {dimension_numbers = #tpu.dot_dimension_numbers<[1], [0], [0], [1], [0, 0, 1, 1], [], []>} : vector<16x8xf32>, vector<8x32xf32>, vector<16x32xf32> -> vector<16x32xf32>
    %298 = arith.addf %276, %297 : vector<16x32xf32>
    %c1_145 = arith.constant 1 : index
    %c0_146 = arith.constant 0 : index
    %c0_147 = arith.constant 0 : index
    %299 = vector.load %arg7[%c1_145, %c0_146, %c0_147] : memref<2x1x32xf32, #tpu.memory_space<vmem>>, vector<1x1x32xf32>
    %300 = vector.shape_cast %299 : vector<1x1x32xf32> to vector<1x32xf32>
    %301 = vector.broadcast %300 : vector<1x32xf32> to vector<16x32xf32>
    %302 = arith.addf %298, %301 : vector<16x32xf32>
    %303 = arith.addf %302, %204 : vector<16x32xf32>
    %c1_148 = arith.constant 1 : index
    %c0_149 = arith.constant 0 : index
    %c0_150 = arith.constant 0 : index
    %304 = vector.load %arg8[%c1_148, %c0_149, %c0_150] : memref<2x1x32xf32, #tpu.memory_space<vmem>>, vector<1x1x32xf32>
    %305 = vector.shape_cast %304 : vector<1x1x32xf32> to vector<1x32xf32>
    %c1_151 = arith.constant 1 : index
    %c0_152 = arith.constant 0 : index
    %c0_153 = arith.constant 0 : index
    %306 = vector.load %arg9[%c1_151, %c0_152, %c0_153] : memref<2x1x32xf32, #tpu.memory_space<vmem>>, vector<1x1x32xf32>
    %307 = vector.shape_cast %306 : vector<1x1x32xf32> to vector<1x32xf32>
    %cst_154 = arith.constant dense<0.000000e+00> : vector<16xf32>
    %308 = vector.multi_reduction <add>, %303, %cst_154 [1] : vector<16x32xf32> to vector<16xf32>
    %309 = vector.shape_cast %308 : vector<16xf32> to vector<16x1xf32>
    %cst_155 = arith.constant 3.200000e+01 : f32
    %310 = vector.broadcast %cst_155 : f32 to vector<16x1xf32>
    %311 = arith.divf %309, %310 : vector<16x1xf32>
    %312 = vector.broadcast %311 : vector<16x1xf32> to vector<16x32xf32>
    %313 = arith.subf %303, %312 : vector<16x32xf32>
    %314 = arith.mulf %313, %313 : vector<16x32xf32>
    %cst_156 = arith.constant dense<0.000000e+00> : vector<16xf32>
    %315 = vector.multi_reduction <add>, %314, %cst_156 [1] : vector<16x32xf32> to vector<16xf32>
    %316 = vector.shape_cast %315 : vector<16xf32> to vector<16x1xf32>
    %cst_157 = arith.constant 3.200000e+01 : f32
    %317 = vector.broadcast %cst_157 : f32 to vector<16x1xf32>
    %318 = arith.divf %316, %317 : vector<16x1xf32>
    %cst_158 = arith.constant 9.99999996E-13 : f32
    %319 = vector.broadcast %cst_158 : f32 to vector<16x1xf32>
    %320 = arith.addf %318, %319 : vector<16x1xf32>
    %321 = math.rsqrt %320 : vector<16x1xf32>
    %322 = vector.broadcast %311 : vector<16x1xf32> to vector<16x32xf32>
    %323 = arith.subf %303, %322 : vector<16x32xf32>
    %324 = vector.broadcast %321 : vector<16x1xf32> to vector<16x32xf32>
    %325 = arith.mulf %323, %324 : vector<16x32xf32>
    %326 = vector.broadcast %305 : vector<1x32xf32> to vector<16x32xf32>
    %327 = arith.mulf %325, %326 : vector<16x32xf32>
    %328 = vector.broadcast %307 : vector<1x32xf32> to vector<16x32xf32>
    %329 = arith.addf %327, %328 : vector<16x32xf32>
    %c1_159 = arith.constant 1 : index
    %c0_160 = arith.constant 0 : index
    %c0_161 = arith.constant 0 : index
    %330 = vector.load %arg10[%c1_159, %c0_160, %c0_161] : memref<2x32x64xf32, #tpu.memory_space<vmem>>, vector<1x32x64xf32>
    %331 = vector.shape_cast %330 : vector<1x32x64xf32> to vector<32x64xf32>
    %cst_162 = arith.constant dense<0.000000e+00> : vector<16x64xf32>
    %332 = tpu.matmul %329, %331, %cst_162 {dimension_numbers = #tpu.dot_dimension_numbers<[1], [0], [0], [1], [0, 0, 1, 1], [], []>} : vector<16x32xf32>, vector<32x64xf32>, vector<16x64xf32> -> vector<16x64xf32>
    %c1_163 = arith.constant 1 : index
    %c0_164 = arith.constant 0 : index
    %c0_165 = arith.constant 0 : index
    %333 = vector.load %arg11[%c1_163, %c0_164, %c0_165] : memref<2x1x64xf32, #tpu.memory_space<vmem>>, vector<1x1x64xf32>
    %334 = vector.shape_cast %333 : vector<1x1x64xf32> to vector<1x64xf32>
    %335 = vector.broadcast %334 : vector<1x64xf32> to vector<16x64xf32>
    %336 = arith.addf %332, %335 : vector<16x64xf32>
    %337 = arith.mulf %336, %336 : vector<16x64xf32>
    %338 = arith.mulf %336, %337 : vector<16x64xf32>
    %cst_166 = arith.constant 4.471500e-02 : f32
    %339 = vector.broadcast %cst_166 : f32 to vector<16x64xf32>
    %340 = arith.mulf %339, %338 : vector<16x64xf32>
    %341 = arith.addf %336, %340 : vector<16x64xf32>
    %cst_167 = arith.constant 0.797884583 : f32
    %342 = vector.broadcast %cst_167 : f32 to vector<16x64xf32>
    %343 = arith.mulf %342, %341 : vector<16x64xf32>
    %344 = math.tanh %343 : vector<16x64xf32>
    %cst_168 = arith.constant 1.000000e+00 : f32
    %345 = vector.broadcast %cst_168 : f32 to vector<16x64xf32>
    %346 = arith.addf %345, %344 : vector<16x64xf32>
    %cst_169 = arith.constant 5.000000e-01 : f32
    %347 = vector.broadcast %cst_169 : f32 to vector<16x64xf32>
    %348 = arith.mulf %347, %346 : vector<16x64xf32>
    %349 = arith.mulf %336, %348 : vector<16x64xf32>
    %c1_170 = arith.constant 1 : index
    %c0_171 = arith.constant 0 : index
    %c0_172 = arith.constant 0 : index
    %350 = vector.load %arg12[%c1_170, %c0_171, %c0_172] : memref<2x64x32xf32, #tpu.memory_space<vmem>>, vector<1x64x32xf32>
    %351 = vector.shape_cast %350 : vector<1x64x32xf32> to vector<64x32xf32>
    %cst_173 = arith.constant dense<0.000000e+00> : vector<16x32xf32>
    %352 = tpu.matmul %349, %351, %cst_173 {dimension_numbers = #tpu.dot_dimension_numbers<[1], [0], [0], [1], [0, 0, 1, 1], [], []>} : vector<16x64xf32>, vector<64x32xf32>, vector<16x32xf32> -> vector<16x32xf32>
    %c1_174 = arith.constant 1 : index
    %c0_175 = arith.constant 0 : index
    %c0_176 = arith.constant 0 : index
    %353 = vector.load %arg13[%c1_174, %c0_175, %c0_176] : memref<2x1x32xf32, #tpu.memory_space<vmem>>, vector<1x1x32xf32>
    %354 = vector.shape_cast %353 : vector<1x1x32xf32> to vector<1x32xf32>
    %355 = vector.broadcast %354 : vector<1x32xf32> to vector<16x32xf32>
    %356 = arith.addf %352, %355 : vector<16x32xf32>
    %357 = arith.addf %356, %329 : vector<16x32xf32>
    %c1_177 = arith.constant 1 : index
    %c0_178 = arith.constant 0 : index
    %c0_179 = arith.constant 0 : index
    %358 = vector.load %arg14[%c1_177, %c0_178, %c0_179] : memref<2x1x32xf32, #tpu.memory_space<vmem>>, vector<1x1x32xf32>
    %359 = vector.shape_cast %358 : vector<1x1x32xf32> to vector<1x32xf32>
    %c1_180 = arith.constant 1 : index
    %c0_181 = arith.constant 0 : index
    %c0_182 = arith.constant 0 : index
    %360 = vector.load %arg15[%c1_180, %c0_181, %c0_182] : memref<2x1x32xf32, #tpu.memory_space<vmem>>, vector<1x1x32xf32>
    %361 = vector.shape_cast %360 : vector<1x1x32xf32> to vector<1x32xf32>
    %cst_183 = arith.constant dense<0.000000e+00> : vector<16xf32>
    %362 = vector.multi_reduction <add>, %357, %cst_183 [1] : vector<16x32xf32> to vector<16xf32>
    %363 = vector.shape_cast %362 : vector<16xf32> to vector<16x1xf32>
    %cst_184 = arith.constant 3.200000e+01 : f32
    %364 = vector.broadcast %cst_184 : f32 to vector<16x1xf32>
    %365 = arith.divf %363, %364 : vector<16x1xf32>
    %366 = vector.broadcast %365 : vector<16x1xf32> to vector<16x32xf32>
    %367 = arith.subf %357, %366 : vector<16x32xf32>
    %368 = arith.mulf %367, %367 : vector<16x32xf32>
    %cst_185 = arith.constant dense<0.000000e+00> : vector<16xf32>
    %369 = vector.multi_reduction <add>, %368, %cst_185 [1] : vector<16x32xf32> to vector<16xf32>
    %370 = vector.shape_cast %369 : vector<16xf32> to vector<16x1xf32>
    %cst_186 = arith.constant 3.200000e+01 : f32
    %371 = vector.broadcast %cst_186 : f32 to vector<16x1xf32>
    %372 = arith.divf %370, %371 : vector<16x1xf32>
    %cst_187 = arith.constant 9.99999996E-13 : f32
    %373 = vector.broadcast %cst_187 : f32 to vector<16x1xf32>
    %374 = arith.addf %372, %373 : vector<16x1xf32>
    %375 = math.rsqrt %374 : vector<16x1xf32>
    %376 = vector.broadcast %365 : vector<16x1xf32> to vector<16x32xf32>
    %377 = arith.subf %357, %376 : vector<16x32xf32>
    %378 = vector.broadcast %375 : vector<16x1xf32> to vector<16x32xf32>
    %379 = arith.mulf %377, %378 : vector<16x32xf32>
    %380 = vector.broadcast %359 : vector<1x32xf32> to vector<16x32xf32>
    %381 = arith.mulf %379, %380 : vector<16x32xf32>
    %382 = vector.broadcast %361 : vector<1x32xf32> to vector<16x32xf32>
    %383 = arith.addf %381, %382 : vector<16x32xf32>
    %384 = vector.extract_strided_slice %383 {offsets = [0, 0], sizes = [1, 32], strides = [1, 1]} : vector<16x32xf32> to vector<1x32xf32>
    %385 = vector.extract_strided_slice %383 {offsets = [8, 0], sizes = [1, 32], strides = [1, 1]} : vector<16x32xf32> to vector<1x32xf32>
    %386 = tpu.concatenate %384, %385 in 0 : vector<1x32xf32>, vector<1x32xf32> -> vector<2x32xf32>
    %c0_188 = arith.constant 0 : index
    %c0_189 = arith.constant 0 : index
    %387 = vector.load %arg16[%c0_188, %c0_189] : memref<2x32xf32, #tpu.memory_space<vmem>>, vector<2x32xf32>
    tpu.vector_store %arg16[%c0_188, %c0_189], %386 {strides = array<i32>} : memref<2x32xf32, #tpu.memory_space<vmem>>, vector<2x32xf32>,
    return
  }
}

</mosaic_0001>

<bundles_post_ra>
// kernel: _encoder_call.1
= control target key start
LH: loop header
LB: loop body
LE: loop exit
PB: predicated region body
PF: predicated region fallthrough
CT: control target
= control target key end

     0   :  { %s4797_s0 = inlined_call_operand.hbm [shape: f32[16,32], index: 0, kind: input, shape index: {}]   ;;  %s4798_s1 = inlined_call_operand.hbm [shape: f32[16,16], index: 1, kind: input, shape index: {}]   ;;  %s4799_s2 = inlined_call_operand.vmem [shape: f32[1,32], index: 2, kind: input, shape index: {}]   ;;  %s4800_s3 = inlined_call_operand.hbm [shape: f32[1,32], index: 3, kind: input, shape index: {}]   ;;  %s4801_s4 = inlined_call_operand.vmem [shape: f32[2,32,96], index: 4, kind: input, shape index: {}]   ;;  %s4802_s5 = inlined_call_operand.vmem [shape: f32[2,1,96], index: 5, kind: input, shape index: {}]   ;;  %s4803_s6 = inlined_call_operand.vmem [shape: f32[2,4,8,32], index: 6, kind: input, shape index: {}]   ;;  %s4804_s7 = inlined_call_operand.vmem [shape: f32[2,1,32], index: 7, kind: input, shape index: {}]   ;;  %s4805_s8 = inlined_call_operand.vmem [shape: f32[2,1,32], index: 8, kind: input, shape index: {}]   ;;  %s4806_s9 = inlined_call_operand.vmem [shape: f32[2,1,32], index: 9, kind: input, shape index: {}]   ;;  %s4807_s10 = inlined_call_operand.vmem [shape: f32[2,32,64], index: 10, kind: input, shape index: {}]   ;;  %s4808_s11 = inlined_call_operand.vmem [shape: f32[2,1,64], index: 11, kind: input, shape index: {}]   ;;  %s4809_s12 = inlined_call_operand.vmem [shape: f32[2,64,32], index: 12, kind: input, shape index: {}]   ;;  %s4810_s13 = inlined_call_operand.vmem [shape: f32[2,1,32], index: 13, kind: input, shape index: {}]   ;;  %s4811_s14 = inlined_call_operand.vmem [shape: f32[2,1,32], index: 14, kind: input, shape index: {}]   ;;  %s4812_s15 = inlined_call_operand.vmem [shape: f32[2,1,32], index: 15, kind: input, shape index: {}]   ;;  %s4813_s16 = inlined_call_operand.hbm [shape: f32[2,32], index: 16, kind: output, shape index: {}]  }
   0x1   :  { %4816 = sst [smem:[#allocation12_spill]] %s4797_s0 }
   0x2   :  { %21 = vsyncpa [#allocation3], 0 }
   0x3   :  { %22 = vsyncpa [#allocation6], 0 }
   0x4   :  { %23 = vsyncpa [#allocation4], 0  ;;  %s4209_s21 = smov [#allocation5]   ;;  %s4210_s23 = smov [#allocation2]  }
   0x5   :  { %s41_s22 = sshll.u32 %s4209_s21, 4  ;;  %s29_s24 = sshll.u32 %s4210_s23, 4  ;;  %s42_s22 = int_to_ptr.vmem [resolvable:$true] %s41_s22  ;;  %s4311_s24 = int_to_ptr.vmem [resolvable:$true] %s29_s24 }
   0x6   :  { %s4115_s27 = scalar_lea.hbm %s4798_s1, 256 }
   0x7   :  { %p4116_p0 = scmp.ne.s32.totalorder %s4798_s1, %s4115_s27  ;;  %p4119_p1 = scmp.lt.u32.totalorder %s4115_s27, %s4798_s1 }
   0x9   :  { %p4121_p2 = pnand %p4119_p1, %p4116_p0 }
   0xb   :  { %4124 = shalt.err (!%p4121_p2)
}
   0xc   :  { %s4125_s17 = scalar_lea.vmem %s42_s22, 256  ;;  %p4130_p4 = scmp.lt.s32.totalorder %s42_s22, %s42_s22 }
   0xd   :  { %p4126_p3 = scmp.ne.s32.totalorder %s42_s22, %s4125_s17  ;;  %p4131_p5 = scmp.lt.s32.totalorder %s4125_s17, %s4125_s17 }
   0xf   :  { %p4132_p6 = por %p4131_p5, %p4130_p4 }
  0x11   :  { %p4133_p7 = pnand %p4132_p6, %p4126_p3 }
  0x13   :  { %4136 = shalt.err (!%p4133_p7)
}
  0x14   :  { %s4211_s18 = smov 128   ;;  %s4212_s19 = smov 8  }
  0x15   :  { %47 = dma.hbm_to_vmem [thread:$0]  %s4798_s1, 256, %s42_s22, [#allocation6], %s4211_s18, %s4211_s18, %s4212_s19  }
  0x16   :  { %s4817_s26 = sld [smem:[#allocation12_spill]] }
  0x1c   :  { %s4137_s28 = scalar_lea.hbm %s4817_s26, 256 }
  0x1d   :  { %p4138_p8 = scmp.ne.s32.totalorder %s4817_s26, %s4137_s28  ;;  %p4141_p9 = scmp.lt.u32.totalorder %s4137_s28, %s4817_s26 }
  0x1f   :  { %p4143_p10 = pnand %p4141_p9, %p4138_p8 }
  0x21   :  { %4146 = shalt.err (!%p4143_p10)
}
  0x22   :  { %s4147_s17 = scalar_lea.vmem %s4311_s24, 256  ;;  %p4152_p12 = scmp.lt.s32.totalorder %s4311_s24, %s4311_s24 }
  0x23   :  { %p4148_p11 = scmp.ne.s32.totalorder %s4311_s24, %s4147_s17  ;;  %p4153_p13 = scmp.lt.s32.totalorder %s4147_s17, %s4147_s17 }
  0x25   :  { %p4154_p0 = por %p4153_p13, %p4152_p12 }
  0x27   :  { %p4155_p1 = pnand %p4154_p0, %p4148_p11 }
  0x29   :  { %4158 = shalt.err (!%p4155_p1)
}
  0x2a   :  { %35 = dma.hbm_to_vmem [thread:$0]  %s4817_s26, 256, %s4311_s24, [#allocation3], %s4211_s18, %s4211_s18, %s4212_s19  }
  0x2b   :  { %s4213_s20 = smov [#allocation7]   ;;  %s4159_s28 = scalar_lea.hbm %s4800_s3, 16 }
  0x2c   :  { %s56_s21 = sshll.u32 %s4213_s20, 4  ;;  %p4160_p2 = scmp.ne.s32.totalorder %s4800_s3, %s4159_s28  ;;  %s57_s21 = int_to_ptr.vmem [resolvable:$true] %s56_s21 }
  0x2d   :  { %p4163_p3 = scmp.lt.u32.totalorder %s4159_s28, %s4800_s3 }
  0x2f   :  { %p4165_p4 = pnand %p4163_p3, %p4160_p2 }
  0x31   :  { %4168 = shalt.err (!%p4165_p4)
}
  0x32   :  { %s4169_s17 = scalar_lea.vmem %s57_s21, 16  ;;  %s4173_s24 = scalar_lea.vmem %s57_s21, 32 }
  0x33   :  { %p4170_p5 = scmp.ne.s32.totalorder %s57_s21, %s4169_s17  ;;  %p4174_p6 = scmp.lt.s32.totalorder %s57_s21, %s57_s21 }
  0x34   :  { %p4175_p7 = scmp.lt.s32.totalorder %s4173_s24, %s4169_s17 }
  0x36   :  { %p4176_p8 = por %p4175_p7, %p4174_p6 }
  0x38   :  { %p4177_p9 = pnand %p4176_p8, %p4170_p5 }
  0x3a   :  { %4180 = shalt.err (!%p4177_p9)
}
  0x3b   :  { %59 = dma.hbm_to_vmem [thread:$0]  %s4800_s3, 16, %s57_s21, [#allocation6]  }
  0x3c   :  { %4203 = dma.done.wait [#allocation3], 256  }
  0x3d   :  { %4204 = vsyncadd [#allocation3], 4294967040 }
  0x3e   :  { %4205 = dma.done.wait [#allocation6], 272  }
  0x3f   :  { %4206 = vsyncadd [#allocation6], 4294967024  ;;  %vm99_vm0 = vcmask 261120   ;;  %v95_v0 = vld [vmem:[#allocation2] sm:$0xff]  ;;  %v96_v1 = vld [vmem:[#allocation2 + $0x8] sm:$0xff]  ;;  %vm241_vm1 = vcmask 64512  }
  0x40   :  { %v100_v2 = vsel %vm99_vm0, %v95_v0, 0.0  ;;  %v103_v3 = vsel %vm99_vm0, %v96_v1, 0.0  ;;  %v143_v14 = vld [vmem:[%s4801_s4] sm:$0xff]  ;;  %v144_v15 = vld [vmem:[%s4801_s4 + $0x8] sm:$0xff]  ;;  %v145_v16 = vld [vmem:[%s4801_s4 + $0x10] sm:$0xff]  ;;  %s4215_s0 = smov 96  }
  0x41   :  { %101 = vadd.xlane.f32.xlu0 %v100_v2  ;;  %v3768_v17 = vpack.c.bf16 %v144_v15, %v143_v14  ;;  %v146_v18 = vld [vmem:[%s4801_s4 + $0x18] sm:$0xff]  ;;  %v3277_v27 = vld [vmem:[%s4799_s2] ss:$0 sm:$0xff]  ;;  %s4214_s2 = smov 88   ;;  %s4216_s17 = smov 120   ;;  %vm4410_vm2 = vmpackc.low %vm241_vm1, %vm241_vm1  ;;  %vm329_vm3 = vcmask 130048  }
  0x42   :  { %v3772_v19 = vpack.c.bf16 %v146_v18, %v145_v16  ;;  %v3278_v29 = vld [vmem:[#allocation7] ss:$0 sm:$0xff]  ;;  %s4217_s24 = smov 80   ;;  %s4218_s18 = smov 112   ;;  %v4432_v60 = vld [vmem:[#allocation5 + $0x8] sm:$0xff]  ;;  %v4434_v63 = vld [vmem:[#allocation5] sm:$0xff] }
  0x43   :  { %3769 = vmatprep.subr.bf16.mxu1 %v3768_v17  ;;  %v3279_v36 = vld [vmem:[%s4802_s5] ss:$0 sm:$0xff]  ;;  %s4219_s19 = smov 64   ;;  %s4220_s3 = smov 72   ;;  %vm1566_vm4 = vcmask 523264   ;;  %vm3257_vm5 = vcmask 1040384  }
  0x44   :  { %3771 = vmatpush3.bf16.msra.mxu1 %v3768_v17  ;;  %s4221_s26 = smov 104   ;;  %s4222_s1 = smov 56   ;;  %vm3259_vm6 = vcmask 254976  }
  0x45   :  { %104 = vadd.xlane.f32.xlu0 %v103_v3  ;;  %3773 = vmatprep.subr.bf16.mxu1 %v3772_v19  ;;  %s4223_s25 = smov 48   ;;  %s4815_s29 = smov 40  }
  0x48   :  { %3775 = vmatpush3.bf16.msra.mxu1 %v3772_v19 }
  0xce   :  { %v102_v4 = vpop.xlane.xlu0 %101 }
  0xcf   :  { %v107_v5 = vmul.f32 0.03125, %v102_v4 }
  0xd1   :  { %v109_v6 = vsub.f32 %v95_v0, %v107_v5 }
  0xd2   :  { %v105_v7 = vpop.xlane.xlu0 %104 }
  0xd3   :  { %v108_v8 = vmul.f32 0.03125, %v105_v7  ;;  %v111_v9 = vmul.f32 %v109_v6, %v109_v6 }
  0xd5   :  { %v110_v10 = vsub.f32 %v96_v1, %v108_v8  ;;  %v113_v11 = vsel %vm99_vm0, %v111_v9, 0.0 }
  0xd6   :  { %114 = vadd.xlane.f32.xlu1 %v113_v11 }
  0xd7   :  { %v112_v12 = vmul.f32 %v110_v10, %v110_v10 }
  0xd9   :  { %v116_v13 = vsel %vm99_vm0, %v112_v12, 0.0 }
  0xda   :  { %117 = vadd.xlane.f32.xlu1 %v116_v13 }
 0x163   :  { %v115_v20 = vpop.xlane.xlu1 %114 }
 0x164   :  { %v119_v21 = vmul.f32 0.03125, %v115_v20 }
 0x166   :  { %v121_v22 = vadd.f32 1e-12, %v119_v21 }
 0x167   :  { %v118_v23 = vpop.xlane.xlu1 %117 }
 0x168   :  { %4021 = vrsqrt.f32 %v121_v22  ;;  %v120_v24 = vmul.f32 0.03125, %v118_v23 }
 0x16a   :  { %v122_v25 = vadd.f32 1e-12, %v120_v24 }
 0x16c   :  { %4023 = vrsqrt.f32 %v122_v25 }
 0x172   :  { %v4022_v26 = vpop.eup %4021 }
 0x173   :  { %v125_v28 = vmul.f32 %v4022_v26, %v109_v6 }
 0x175   :  { %v133_v30 = vmul.f32 %v3277_v27, %v125_v28 }
 0x176   :  { %v4024_v31 = vpop.eup %4023 }
 0x177   :  { %v126_v32 = vmul.f32 %v4024_v31, %v110_v10  ;;  %v4373_v33 = vadd.f32 %v3278_v29, %v133_v30 }
 0x179   :  { %v134_v34 = vmul.f32 %v3277_v27, %v126_v32  ;;  %3542 = vmatprep.mubr.msk.f32.mxu1 %vm99_vm0, %v4373_v33 }
 0x17b   :  { %v4377_v35 = vadd.f32 %v3278_v29, %v134_v34 }
 0x17d   :  { %3543 = vmatmul.mubr.msk.f32.vlgmr.msra.gmra.mrb[0].mxu1 %vm99_vm0, %v4377_v35 }
 0x250   :  { %v3544_v37 = vpop.f32.mrb[0].mxu1 }
 0x251   :  { %v4384_v38 = vadd.f32 %v3544_v37, %v3279_v36  ;;  %v226_v39 = vpop.f32.mrb[1].mxu1 }
 0x252   :  { %v4386_v40 = vadd.f32 %v3279_v36, %v226_v39 }
 0x254   :  { %3549 = vmatprep.mubr.msk.f32.mxu1 %vm241_vm1, %v4386_v40  ;;  %v4392_v41 = vpack.i.bf16 %v4384_v38, %v4386_v40 }
 0x256   :  { %3947 = vrot.lane.b32.xlu1 %v4392_v41, %s4214_s2  ;;  %3942 = vrot.lane.b32.xlu0 %v4392_v41, %s4215_s0 }
 0x25a   :  { %440 = vrot.lane.b32.xlu1 %v4386_v40, %s4216_s17  ;;  %3952 = vrot.lane.b32.xlu0 %v4392_v41, %s4217_s24 }
 0x25e   :  { %442 = vrot.lane.b32.xlu1 %v4384_v38, %s4216_s17  ;;  %810 = vrot.lane.b32.xlu0 %v4384_v38, %s4218_s18 }
 0x262   :  { %808 = vrot.lane.b32.xlu1 %v4386_v40, %s4218_s18 }
 0x2c8   :  { %v3948_v42 = vpop.permute.xlu1 %3947  ;;  %v3943_v43 = vpop.permute.xlu0 %3942 }
 0x2c9   :  { %v3950_v44 = vunpack.i.h.bf16 %v3948_v42  ;;  %v3949_v45 = vunpack.i.l.bf16 %v3948_v42  ;;  %v3945_v46 = vunpack.i.h.bf16 %v3943_v43  ;;  %v3944_v47 = vunpack.i.l.bf16 %v3943_v43 }
 0x2cb   :  { %v3776_v49 = vpack.c.bf16 %v3945_v46, %v3944_v47  ;;  %v3786_v50 = vpack.c.bf16 %v3950_v44, %v3949_v45 }
 0x2cc   :  { %v3953_v51 = vpop.permute.xlu0 %3952  ;;  %v441_v52 = vpop.permute.xlu1 %440 }
 0x2cd   :  { %3778 = vmatprep.subr.msk.bf16.mxu1 %vm4410_vm2, %v3776_v49  ;;  %v3955_v53 = vunpack.i.h.bf16 %v3953_v51  ;;  %v3954_v54 = vunpack.i.l.bf16 %v3953_v51 }
 0x2ce   :  { %3781 = vmatpush3.bf16.xpose.msk.msra.mxu1 %vm4410_vm2, %v3776_v49 }
 0x2cf   :  { %3788 = vmatprep.subr.msk.bf16.mxu1 %vm4410_vm2, %v3786_v50  ;;  %v3796_v55 = vpack.c.bf16 %v3955_v53, %v3954_v54 }
 0x2d0   :  { %v443_v56 = vpop.permute.xlu1 %442  ;;  %v811_v58 = vpop.permute.xlu0 %810 }
 0x2d4   :  { %v809_v57 = vpop.permute.xlu1 %808 }
 0x2d5   :  { %3550 = vmatmul.mubr.msk.f32.vlgmr.msra.gmra.mrb[2].mxu1 %vm241_vm1, %v4384_v38 }
 0x2d6   :  { %3791 = vmatpush3.bf16.xpose.msk.msra.mxu1 %vm4410_vm2, %v3786_v50  ;;  %3563 = vmatprep.mubr.msk.f32.mxu1 %vm241_vm1, %v441_v52 }
 0x2d7   :  { %3798 = vmatprep.subr.msk.bf16.mxu1 %vm4410_vm2, %v3796_v55 }
 0x2dd   :  { %3564 = vmatmul.mubr.msk.f32.vlgmr.msra.gmra.mrb[4].mxu1 %vm241_vm1, %v443_v56 }
 0x2de   :  { %3801 = vmatpush3.bf16.xpose.msk.msra.mxu1 %vm4410_vm2, %v3796_v55  ;;  %3587 = vmatprep.mubr.msk.f32.mxu1 %vm241_vm1, %v809_v57 }
 0x2e5   :  { %3588 = vmatmul.mubr.msk.f32.vlgmr.msra.gmra.mrb[6].mxu1 %vm241_vm1, %v811_v58 }
 0x3a8   :  { %v3551_v59 = vpop.f32.mrb[2].mxu1 }
 0x3a9   :  { %v326_v61 = vmul.f32 0.35355338, %v3551_v59  ;;  %v316_v62 = vpop.f32.mrb[3].mxu1 }
 0x3aa   :  { %v325_v0 = vmul.f32 0.35355338, %v316_v62 }
 0x3ab   :  { %v328_v1 = vadd.f32 %v326_v61, %v4432_v60 }
 0x3ac   :  { %v327_v2 = vadd.f32 %v325_v0, %v4434_v63 }
 0x3ad   :  { %v333_v3 = vsel %vm329_vm3, %v328_v1, -inf }
 0x3ae   :  { %334 = vmax.xlane.f32.xlu0 %v333_v3  ;;  %v330_v4 = vsel %vm329_vm3, %v327_v2, -inf }
 0x3af   :  { %331 = vmax.xlane.f32.xlu1 %v330_v4 }
 0x3b0   :  { %v3565_v5 = vpop.f32.mrb[4].mxu1 }
 0x3b1   :  { %v522_v6 = vpop.f32.mrb[5].mxu1  ;;  %v532_v7 = vmul.f32 0.35355338, %v3565_v5 }
 0x3b2   :  { %v531_v8 = vmul.f32 0.35355338, %v522_v6 }
 0x3b3   :  { %v534_v11 = vadd.f32 %v532_v7, %v4432_v60 }
 0x3b4   :  { %v533_v9 = vadd.f32 %v531_v8, %v4434_v63 }
 0x3b5   :  { %v538_v14 = vsel %vm329_vm3, %v534_v11, -inf }
 0x3b6   :  { %v535_v10 = vsel %vm329_vm3, %v533_v9, -inf }
 0x3b7   :  { %536 = vmax.xlane.f32.xlu0 %v535_v10 }
 0x3b8   :  { %v3589_v12 = vpop.f32.mrb[6].mxu1 }
 0x3b9   :  { %v890_v13 = vpop.f32.mrb[7].mxu1  ;;  %v900_v42 = vmul.f32 0.35355338, %v3589_v12 }
 0x3ba   :  { %v899_v37 = vmul.f32 0.35355338, %v890_v13 }
 0x3bb   :  { %539 = vmax.xlane.f32.xlu0 %v538_v14  ;;  %v902_v44 = vadd.f32 %v900_v42, %v4432_v60 }
 0x3bc   :  { %v901_v39 = vadd.f32 %v899_v37, %v4434_v63 }
 0x3bd   :  { %v906_v45 = vsel %vm329_vm3, %v902_v44, -inf }
 0x3be   :  { %v903_v43 = vsel %vm329_vm3, %v901_v39, -inf }
 0x43b   :  { %v335_v15 = vpop.xlane.xlu0 %334 }
 0x43c   :  { %v337_v16 = vsub.f32 %v328_v1, %v335_v15  ;;  %v332_v17 = vpop.xlane.xlu1 %331 }
 0x43d   :  { %v336_v18 = vsub.f32 %v327_v2, %v332_v17 }
 0x43e   :  { %v340_v19 = vmul.f32 1.442695, %v337_v16 }
 0x43f   :  { %v338_v20 = vmul.f32 1.442695, %v336_v18 }
 0x440   :  { %4025 = vpow2.f32 %v340_v19  ;;  %v3294_v19 = vld [vmem:[%s4803_s6 + $0x8] sm:$0xff] }
 0x441   :  { %4027 = vpow2.f32 %v338_v20  ;;  %v439_v20 = vld [vmem:[%s4803_s6] sm:$0xff] }
 0x444   :  { %v537_v21 = vpop.xlane.xlu0 %536 }
 0x445   :  { %v541_v22 = vsub.f32 %v533_v9, %v537_v21 }
 0x447   :  { %v543_v23 = vmul.f32 1.442695, %v541_v22 }
 0x448   :  { %v540_v24 = vpop.xlane.xlu0 %539 }
 0x449   :  { %4029 = vpow2.f32 %v543_v23  ;;  %v542_v25 = vsub.f32 %v534_v11, %v540_v24 }
 0x44a   :  { %v4026_v26 = vpop.eup %4025 }
 0x44b   :  { %v4028_v27 = vpop.eup %4027  ;;  %v545_v28 = vmul.f32 1.442695, %v542_v25  ;;  %v345_v29 = vsel %vm329_vm3, %v4026_v26, 0.0 }
 0x44c   :  { %346 = vadd.xlane.f32.xlu0 %v345_v29  ;;  %v342_v30 = vsel %vm329_vm3, %v4028_v27, 0.0 }
 0x44d   :  { %4031 = vpow2.f32 %v545_v28  ;;  %343 = vadd.xlane.f32.xlu1 %v342_v30 }
 0x453   :  { %v4030_v31 = vpop.eup %4029 }
 0x454   :  { %v547_v32 = vsel %vm329_vm3, %v4030_v31, 0.0 }
 0x455   :  { %548 = vadd.xlane.f32.xlu1 %v547_v32 }
 0x457   :  { %v4032_v34 = vpop.eup %4031 }
 0x458   :  { %v550_v36 = vsel %vm329_vm3, %v4032_v34, 0.0 }
 0x459   :  { %551 = vadd.xlane.f32.xlu0 %v550_v36 }
 0x466   :  { %3957 = vrot.lane.b32.xlu1 %v4392_v41, %s4219_s19 }
 0x46a   :  { %3967 = vrot.lane.b32.xlu1 %v4392_v41, %s4220_s3 }
 0x46e   :  { %1097 = vrot.lane.b32.xlu1 %v4386_v40, %s4221_s26 }
 0x46f   :  { %3962 = vrot.lane.b32.xlu0 %v4392_v41, %s4222_s1 }
 0x472   :  { %1099 = vrot.lane.b32.xlu1 %v4384_v38, %s4221_s26 }
 0x48e   :  { %904 = vmax.xlane.f32.xlu0 %v903_v43 }
 0x496   :  { %907 = vmax.xlane.f32.xlu1 %v906_v45 }
 0x4d9   :  { %v347_v46 = vpop.xlane.xlu0 %346 }
 0x4da   :  { %v344_v40 = vpop.xlane.xlu1 %343 }
 0x4db   :  { %4033 = vrcp.f32 %v344_v40 }
 0x4dc   :  { %4035 = vrcp.f32 %v347_v46 }
 0x4e2   :  { %v549_v47 = vpop.xlane.xlu1 %548 }
 0x4e3   :  { %4037 = vrcp.f32 %v549_v47  ;;  %v3305_v47 = vld [vmem:[%s4803_s6 + $0x10] sm:$0xff] }
 0x4e5   :  { %v4034_v49 = vpop.eup %4033 }
 0x4e6   :  { %v552_v38 = vpop.xlane.xlu0 %551  ;;  %v3958_v50 = vpop.permute.xlu1 %3957  ;;  %v350_v51 = vmul.f32 %v4034_v49, %v4028_v27 }
 0x4e7   :  { %4039 = vrcp.f32 %v552_v38  ;;  %v3960_v52 = vunpack.i.h.bf16 %v3958_v50  ;;  %v3959_v53 = vunpack.i.l.bf16 %v3958_v50  ;;  %v4036_v55 = vpop.eup %4035 }
 0x4e8   :  { %3556 = vmatprep.mubr.msk.f32.mxu0 %vm329_vm3, %v350_v51  ;;  %v351_v3 = vmul.f32 %v4036_v55, %v4026_v26 }
 0x4e9   :  { %v3782_v54 = vpack.c.bf16 %v3960_v52, %v3959_v53 }
 0x4ea   :  { %v3963_v56 = vpop.permute.xlu0 %3962  ;;  %v3968_v57 = vpop.permute.xlu1 %3967 }
 0x4eb   :  { %v3965_v58 = vunpack.i.h.bf16 %v3963_v56  ;;  %v3964_v59 = vunpack.i.l.bf16 %v3963_v56  ;;  %v3970_v61 = vunpack.i.h.bf16 %v3968_v57  ;;  %v3969_v62 = vunpack.i.l.bf16 %v3968_v57  ;;  %3783 = vmatprep.subr.bf16.mxu0 %v3782_v54 }
 0x4ec   :  { %3785 = vmatpush3.bf16.msra.mxu0 %v3782_v54 }
 0x4ed   :  { %v4038_v0 = vpop.eup %4037  ;;  %v3792_v1 = vpack.c.bf16 %v3965_v58, %v3964_v59  ;;  %v3806_v2 = vpack.c.bf16 %v3970_v61, %v3969_v62 }
 0x4ee   :  { %v1098_v4 = vpop.permute.xlu1 %1097  ;;  %v555_v5 = vmul.f32 %v4038_v0, %v4030_v31 }
 0x4ef   :  { %3557 = vmatmul.mubr.msk.f32.vlgmr.msra.gmra.mrb[0].mxu0 %vm329_vm3, %v351_v3  ;;  %3793 = vmatprep.subr.bf16.mxu0 %v3792_v1 }
 0x4f0   :  { %3808 = vmatprep.subr.msk.bf16.mxu1 %vm4410_vm2, %v3806_v2  ;;  %3606 = vmatprep.mubr.msk.f32.mxu1 %vm241_vm1, %v1098_v4  ;;  %v3314_v4 = vld [vmem:[%s4803_s6 + $0x18] sm:$0xff] }
 0x4f1   :  { %v4040_v6 = vpop.eup %4039  ;;  %3795 = vmatpush3.bf16.msra.mxu0 %v3792_v1  ;;  %3570 = vmatprep.mubr.msk.f32.mxu0 %vm329_vm3, %v555_v5 }
 0x4f2   :  { %v556_v7 = vmul.f32 %v4040_v6, %v4032_v34  ;;  %3811 = vmatpush3.bf16.xpose.msk.msra.mxu1 %vm4410_vm2, %v3806_v2  ;;  %v1100_v8 = vpop.permute.xlu1 %1099  ;;  %3573 = vmatprep.subr.mxu0 %v3294_v19 }
 0x4f4   :  { %3571 = vmatmul.mubr.msk.f32.vlgmr.msra.gmra.mrb[2].mxu0 %vm329_vm3, %v556_v7 }
 0x4f5   :  { %3574 = vmatpush3.msra.mxu0 %v3294_v19 }
 0x4f6   :  { %3578 = vmatprep.subr.mxu0 %v439_v20 }
 0x4f9   :  { %3607 = vmatmul.mubr.msk.f32.vlgmr.msra.gmra.mrb[8].mxu1 %vm241_vm1, %v1100_v8 }
 0x51b   :  { %v905_v9 = vpop.xlane.xlu0 %904 }
 0x51c   :  { %v909_v10 = vsub.f32 %v901_v39, %v905_v9 }
 0x51e   :  { %v911_v13 = vmul.f32 1.442695, %v909_v10  ;;  %v3317_v10 = vld [vmem:[%s4804_s7] ss:$0 sm:$0xff] }
 0x523   :  { %v908_v11 = vpop.xlane.xlu1 %907 }
 0x524   :  { %v910_v12 = vsub.f32 %v902_v44, %v908_v11 }
 0x526   :  { %v913_v14 = vmul.f32 1.442695, %v910_v12 }
 0x528   :  { %4041 = vpow2.f32 %v913_v14 }
 0x529   :  { %4043 = vpow2.f32 %v911_v13 }
 0x532   :  { %v4042_v15 = vpop.eup %4041 }
 0x533   :  { %v918_v16 = vsel %vm329_vm3, %v4042_v15, 0.0  ;;  %v4044_v17 = vpop.eup %4043 }
 0x534   :  { %919 = vadd.xlane.f32.xlu0 %v918_v16  ;;  %v915_v18 = vsel %vm329_vm3, %v4044_v17, 0.0 }
 0x538   :  { %916 = vadd.xlane.f32.xlu0 %v915_v18 }
 0x54e   :  { %3972 = vrot.lane.b32.xlu0 %v4392_v41, %s4223_s25 }
 0x5c1   :  { %v920_v21 = vpop.xlane.xlu0 %919 }
 0x5c2   :  { %v3558_v22 = vpop.f32.mrb[0].mxu0 }
 0x5c3   :  { %v430_v23 = vpop.f32.mrb[1].mxu0 }
 0x5c5   :  { %v917_v24 = vpop.xlane.xlu0 %916 }
 0x5c6   :  { %4045 = vrcp.f32 %v917_v24 }
 0x5c7   :  { %4047 = vrcp.f32 %v920_v21  ;;  %v3572_v25 = vpop.f32.mrb[2].mxu0 }
 0x5c8   :  { %v635_v26 = vpop.f32.mrb[3].mxu0 }
 0x5c9   :  { %v3973_v27 = vpop.permute.xlu0 %3972  ;;  %3575 = vmatprep.mubr.msk.f32.mxu0 %vm241_vm1, %v635_v26 }
 0x5ca   :  { %v3975_v28 = vunpack.i.h.bf16 %v3973_v27  ;;  %v3974_v29 = vunpack.i.l.bf16 %v3973_v27  ;;  %3576 = vmatmul.mubr.msk.f32.vlgmr.msra.gmra.mrb[4].mxu0 %vm241_vm1, %v3572_v25 }
 0x5cb   :  { %3580 = vmatprep.mubr.msk.f32.mxu0 %vm241_vm1, %v430_v23  ;;  %3579 = vmatpush3.msra.mxu0 %v439_v20 }
 0x5cc   :  { %v3802_v30 = vpack.c.bf16 %v3975_v28, %v3974_v29  ;;  %v3608_v31 = vpop.f32.mrb[8].mxu1  ;;  %v1442_v28 = vld [vmem:[%s4807_s10 + $0x8] sm:$0xff] }
 0x5cd   :  { %v1179_v32 = vpop.f32.mrb[9].mxu1  ;;  %v1189_v34 = vmul.f32 0.35355338, %v3608_v31  ;;  %v1444_v31 = vld [vmem:[%s4807_s10 + $0x18] sm:$0xff] }
 0x5ce   :  { %v1188_v36 = vmul.f32 0.35355338, %v1179_v32  ;;  %3803 = vmatprep.subr.bf16.mxu0 %v3802_v30 }
 0x5cf   :  { %v1191_v45 = vadd.f32 %v1189_v34, %v4432_v60 }
 0x5d0   :  { %v4046_v37 = vpop.eup %4045  ;;  %v1190_v39 = vadd.f32 %v1188_v36, %v4434_v63 }
 0x5d1   :  { %v4048_v42 = vpop.eup %4047  ;;  %v923_v43 = vmul.f32 %v4046_v37, %v4044_v17  ;;  %v1195_v46 = vsel %vm329_vm3, %v1191_v45, -inf }
 0x5d2   :  { %v1192_v44 = vsel %vm329_vm3, %v1190_v39, -inf  ;;  %3581 = vmatmul.mubr.msk.f32.vlgmr.msra.gmra.mrb[4].mxu0 %vm241_vm1, %v3558_v22  ;;  %v924_v40 = vmul.f32 %v4048_v42, %v4042_v15 }
 0x5d3   :  { %1193 = vmax.xlane.f32.xlu1 %v1192_v44  ;;  %3805 = vmatpush3.bf16.msra.mxu0 %v3802_v30  ;;  %v1443_v30 = vld [vmem:[%s4807_s10 + $0x10] sm:$0xff] }
 0x5d4   :  { %3594 = vmatprep.mubr.msk.f32.mxu0 %vm329_vm3, %v923_v43  ;;  %3597 = vmatprep.subr.mxu0 %v3305_v47  ;;  %v3820_v32 = vpack.c.bf16 %v1444_v31, %v1443_v30 }
 0x5d6   :  { %3595 = vmatmul.mubr.msk.f32.vlgmr.msra.gmra.mrb[6].mxu0 %vm329_vm3, %v924_v40 }
 0x5d7   :  { %1196 = vmax.xlane.f32.xlu1 %v1195_v46  ;;  %3598 = vmatpush3.msra.mxu0 %v3305_v47  ;;  %v3319_v46 = vld [vmem:[%s4806_s9] ss:$0 sm:$0xff] }
 0x660   :  { %v1194_v49 = vpop.xlane.xlu1 %1193 }
 0x661   :  { %v1198_v38 = vsub.f32 %v1190_v39, %v1194_v49 }
 0x663   :  { %v1200_v52 = vmul.f32 1.442695, %v1198_v38 }
 0x664   :  { %v1197_v50 = vpop.xlane.xlu1 %1196 }
 0x665   :  { %v1199_v51 = vsub.f32 %v1191_v45, %v1197_v50  ;;  %v3318_v45 = vld [vmem:[%s4805_s8] ss:$0 sm:$0xff] }
 0x667   :  { %v1202_v53 = vmul.f32 1.442695, %v1199_v51 }
 0x669   :  { %4049 = vpow2.f32 %v1202_v53  ;;  %v1551_v53 = vld [vmem:[%s4809_s12] sm:$0xff] }
 0x66a   :  { %4051 = vpow2.f32 %v1200_v52 }
 0x673   :  { %v4050_v54 = vpop.eup %4049 }
 0x674   :  { %v1207_v55 = vsel %vm329_vm3, %v4050_v54, 0.0  ;;  %v4052_v56 = vpop.eup %4051 }
 0x675   :  { %1208 = vadd.xlane.f32.xlu1 %v1207_v55  ;;  %v1204_v57 = vsel %vm329_vm3, %v4052_v56, 0.0 }
 0x679   :  { %1205 = vadd.xlane.f32.xlu1 %v1204_v57  ;;  %v1554_v57 = vld [vmem:[%s4809_s12 + $0x18] sm:$0xff] }
 0x68a   :  { %3977 = vrot.lane.b32.xlu1 %v4392_v41, %s4815_s29  ;;  %s4225_s29 = smov [#allocation8]  }
 0x6a9   :  { %v3596_v58 = vpop.f32.mrb[6].mxu0 }
 0x6aa   :  { %v1003_v59 = vpop.f32.mrb[7].mxu0 }
 0x6ab   :  { %3599 = vmatprep.mubr.msk.f32.mxu0 %vm241_vm1, %v1003_v59  ;;  %v1555_v59 = vld [vmem:[%s4809_s12 + $0x20] sm:$0xff] }
 0x6ac   :  { %3600 = vmatmul.mubr.msk.f32.vlgmr.msra.gmra.mrb[4].mxu0 %vm241_vm1, %v3596_v58 }
 0x702   :  { %v1209_v61 = vpop.xlane.xlu1 %1208 }
 0x703   :  { %4053 = vrcp.f32 %v1209_v61  ;;  %v1556_v61 = vld [vmem:[%s4809_s12 + $0x28] sm:$0xff] }
 0x706   :  { %v1206_v62 = vpop.xlane.xlu1 %1205 }
 0x707   :  { %4055 = vrcp.f32 %v1206_v62  ;;  %v3832_v62 = vpack.c.bf16 %v1556_v61, %v1555_v59  ;;  %v3326_v59 = vld [vmem:[%s4811_s14] ss:$0 sm:$0xff] }
 0x70a   :  { %v3978_v0 = vpop.permute.xlu1 %3977 }
 0x70b   :  { %v3980_v1 = vunpack.i.h.bf16 %v3978_v0  ;;  %v3979_v2 = vunpack.i.l.bf16 %v3978_v0  ;;  %v1557_v0 = vld [vmem:[%s4809_s12 + $0x30] sm:$0xff] }
 0x70d   :  { %v3812_v3 = vpack.c.bf16 %v3980_v1, %v3979_v2  ;;  %v4054_v41 = vpop.eup %4053  ;;  %v1558_v1 = vld [vmem:[%s4809_s12 + $0x38] sm:$0xff] }
 0x70e   :  { %v1213_v7 = vmul.f32 %v4054_v41, %v4050_v54  ;;  %v1552_v54 = vld [vmem:[%s4809_s12 + $0x8] sm:$0xff]  ;;  %v3836_v2 = vpack.c.bf16 %v1558_v1, %v1557_v0 }
 0x70f   :  { %3813 = vmatprep.subr.bf16.mxu0 %v3812_v3  ;;  %v3824_v55 = vpack.c.bf16 %v1552_v54, %v1551_v53 }
 0x710   :  { %3815 = vmatpush3.bf16.msra.mxu0 %v3812_v3  ;;  %v3320_v3 = vld [vmem:[%s4808_s11] ss:$0 sm:$0xff] }
 0x711   :  { %v4056_v5 = vpop.eup %4055  ;;  %3616 = vmatprep.subr.mxu0 %v3314_v4 }
 0x712   :  { %v1212_v6 = vmul.f32 %v4056_v5, %v4052_v56  ;;  %v1553_v56 = vld [vmem:[%s4809_s12 + $0x10] sm:$0xff] }
 0x713   :  { %v3828_v58 = vpack.c.bf16 %v1554_v57, %v1553_v56 }
 0x714   :  { %3613 = vmatprep.mubr.msk.f32.mxu0 %vm329_vm3, %v1212_v6 }
 0x715   :  { %3614 = vmatmul.mubr.msk.f32.vlgmr.msra.gmra.mrb[8].mxu0 %vm329_vm3, %v1213_v7 }
 0x716   :  { %3617 = vmatpush3.msra.mxu0 %v3314_v4 }
 0x717   :  { %3825 = vmatprep.subr.bf16.mxu0 %v3824_v55 }
 0x7e8   :  { %v3615_v8 = vpop.f32.mrb[8].mxu0 }
 0x7e9   :  { %v1292_v9 = vpop.f32.mrb[9].mxu0 }
 0x7ea   :  { %3618 = vmatprep.mubr.msk.f32.mxu0 %vm241_vm1, %v1292_v9 }
 0x7eb   :  { %3619 = vmatmul.mubr.msk.f32.vlgmr.msra.gmra.mrb[4].mxu0 %vm241_vm1, %v3615_v8 }
 0x7ec   :  { %3827 = vmatpush3.bf16.msra.mxu0 %v3824_v55 }
 0x7ed   :  { %3829 = vmatprep.subr.bf16.mxu0 %v3828_v58 }
 0x7f0   :  { %3831 = vmatpush3.bf16.msra.mxu0 %v3828_v58 }
 0x7f1   :  { %3833 = vmatprep.subr.bf16.mxu0 %v3832_v62 }
 0x7f4   :  { %3835 = vmatpush3.bf16.msra.mxu0 %v3832_v62  ;;  %v3327_v62 = vld [vmem:[%s4812_s15] ss:$0 sm:$0xff] }
 0x7f5   :  { %3837 = vmatprep.subr.bf16.mxu0 %v3836_v2 }
 0x7f8   :  { %3839 = vmatpush3.bf16.msra.mxu0 %v3836_v2 }
 0x8be   :  { %v3620_v11 = vpop.f32.mrb[4].mxu0 }
 0x8bf   :  { %v1394_v12 = vadd.f32 %v3620_v11, %v3317_v10  ;;  %v1375_v13 = vpop.f32.mrb[5].mxu0 }
 0x8c0   :  { %v1393_v14 = vadd.f32 %v3317_v10, %v1375_v13 }
 0x8c1   :  { %v1396_v15 = vadd.f32 %v1394_v12, %v4377_v35 }
 0x8c2   :  { %v1395_v16 = vadd.f32 %v1393_v14, %v4373_v33  ;;  %v1441_v33 = vld [vmem:[%s4807_s10] sm:$0xff] }
 0x8c3   :  { %v1402_v17 = vsel %vm99_vm0, %v1396_v15, 0.0  ;;  %v3816_v29 = vpack.c.bf16 %v1442_v28, %v1441_v33 }
 0x8c4   :  { %1403 = vadd.xlane.f32.xlu1 %v1402_v17  ;;  %v1399_v18 = vsel %vm99_vm0, %v1395_v16, 0.0 }
 0x8c5   :  { %1400 = vadd.xlane.f32.xlu0 %v1399_v18  ;;  %3817 = vmatprep.subr.bf16.mxu1 %v3816_v29 }
 0x8c6   :  { %3819 = vmatpush3.bf16.msra.mxu1 %v3816_v29 }
 0x8c7   :  { %3821 = vmatprep.subr.bf16.mxu1 %v3820_v32 }
 0x8ca   :  { %3823 = vmatpush3.bf16.msra.mxu1 %v3820_v32 }
 0x951   :  { %v1404_v19 = vpop.xlane.xlu1 %1403 }
 0x952   :  { %v1406_v20 = vmul.f32 0.03125, %v1404_v19  ;;  %v1401_v21 = vpop.xlane.xlu0 %1400 }
 0x953   :  { %v1405_v22 = vmul.f32 0.03125, %v1401_v21 }
 0x954   :  { %v1408_v23 = vsub.f32 %v1396_v15, %v1406_v20 }
 0x955   :  { %v1407_v24 = vsub.f32 %v1395_v16, %v1405_v22 }
 0x956   :  { %v1410_v27 = vmul.f32 %v1408_v23, %v1408_v23 }
 0x957   :  { %v1409_v25 = vmul.f32 %v1407_v24, %v1407_v24 }
 0x958   :  { %v1414_v35 = vsel %vm99_vm0, %v1410_v27, 0.0 }
 0x959   :  { %v1411_v26 = vsel %vm99_vm0, %v1409_v25, 0.0  ;;  %v3323_v25 = vld [vmem:[%s4810_s13] ss:$0 sm:$0xff] }
 0x95a   :  { %1412 = vadd.xlane.f32.xlu0 %v1411_v26 }
 0x95e   :  { %1415 = vadd.xlane.f32.xlu0 %v1414_v35 }
 0x9e7   :  { %v1413_v34 = vpop.xlane.xlu0 %1412 }
 0x9e8   :  { %v1417_v36 = vmul.f32 0.03125, %v1413_v34 }
 0x9ea   :  { %v1419_v37 = vadd.f32 1e-12, %v1417_v36 }
 0x9eb   :  { %v1416_v39 = vpop.xlane.xlu0 %1415 }
 0x9ec   :  { %4057 = vrsqrt.f32 %v1419_v37  ;;  %v1418_v42 = vmul.f32 0.03125, %v1416_v39 }
 0x9ee   :  { %v1420_v43 = vadd.f32 1e-12, %v1418_v42 }
 0x9f0   :  { %4059 = vrsqrt.f32 %v1420_v43 }
 0x9f6   :  { %v4058_v44 = vpop.eup %4057 }
 0x9f7   :  { %v1423_v40 = vmul.f32 %v4058_v44, %v1407_v24 }
 0x9f9   :  { %v1431_v47 = vmul.f32 %v3318_v45, %v1423_v40 }
 0x9fa   :  { %v4060_v49 = vpop.eup %4059 }
 0x9fb   :  { %v1424_v38 = vmul.f32 %v4060_v49, %v1408_v23  ;;  %v1439_v50 = vadd.f32 %v3319_v46, %v1431_v47  ;;  %v3329_v47 = vld [vmem:[%s4801_s4 + $0x28] sm:$0xff] }
 0x9fd   :  { %v1432_v51 = vmul.f32 %v3318_v45, %v1424_v38  ;;  %3629 = vmatprep.mubr.msk.f32.mxu1 %vm99_vm0, %v1439_v50  ;;  %v3330_v38 = vld [vmem:[%s4801_s4 + $0x30] sm:$0xff] }
 0x9ff   :  { %v1440_v52 = vadd.f32 %v3319_v46, %v1432_v51  ;;  %v3328_v46 = vld [vmem:[%s4801_s4 + $0x20] sm:$0xff] }
 0xa00   :  { %v3840_v49 = vpack.c.bf16 %v3329_v47, %v3328_v46 }
 0xa01   :  { %3630 = vmatmul.mubr.msk.f32.vlgmr.msra.gmra.mrb[10].mxu1 %vm99_vm0, %v1440_v52 }
 0xa02   :  { %3841 = vmatprep.subr.bf16.mxu1 %v3840_v49 }
 0xa03   :  { %3843 = vmatpush3.bf16.msra.mxu1 %v3840_v49 }
 0xad4   :  { %v3631_v4 = vpop.f32.mrb[10].mxu1 }
 0xad5   :  { %v1530_v41 = vadd.f32 %v3631_v4, %v3320_v3  ;;  %v1524_v5 = vpop.f32.mrb[11].mxu1 }
 0xad6   :  { %v1525_v6 = vadd.f32 %v3320_v3, %v1524_v5  ;;  %v3333_v5 = vld [vmem:[%s4802_s5 + $0x1] ss:$0 sm:$0xff] }
 0xad7   :  { %v1534_v7 = vmul.f32 %v1530_v41, %v1530_v41 }
 0xad8   :  { %v1533_v8 = vmul.f32 %v1525_v6, %v1525_v6 }
 0xad9   :  { %v1536_v9 = vmul.f32 %v1534_v7, %v1530_v41 }
 0xada   :  { %v1535_v10 = vmul.f32 %v1533_v8, %v1525_v6 }
 0xadb   :  { %v1538_v11 = vmul.f32 0.044715, %v1536_v9 }
 0xadc   :  { %v1537_v12 = vmul.f32 0.044715, %v1535_v10 }
 0xadd   :  { %v1540_v13 = vadd.f32 %v1538_v11, %v1530_v41 }
 0xade   :  { %v1539_v14 = vadd.f32 %v1537_v12, %v1525_v6 }
 0xadf   :  { %v1542_v15 = vmul.f32 0.7978846, %v1540_v13 }
 0xae0   :  { %v1541_v16 = vmul.f32 0.7978846, %v1539_v14 }
 0xae1   :  { %4061 = vtanh.f32 %v1542_v15 }
 0xae2   :  { %4063 = vtanh.f32 %v1541_v16 }
 0xaeb   :  { %v4062_v17 = vpop.eup %4061 }
 0xaec   :  { %v4064_v18 = vpop.eup %4063  ;;  %v1546_v19 = vadd.f32 1.0, %v4062_v17 }
 0xaed   :  { %v1545_v20 = vadd.f32 1.0, %v4064_v18 }
 0xaee   :  { %v1548_v21 = vmul.f32 0.5, %v1546_v19 }
 0xaef   :  { %v1547_v22 = vmul.f32 0.5, %v1545_v20 }
 0xaf0   :  { %v1550_v24 = vmul.f32 %v1548_v21, %v1530_v41 }
 0xaf1   :  { %v1549_v23 = vmul.f32 %v1547_v22, %v1525_v6 }
 0xaf3   :  { %3648 = vmatprep.mubr.msk.f32.mxu0 %vm1566_vm4, %v1549_v23 }
 0xaf4   :  { %3649 = vmatmul.mubr.msk.f32.vlgmr.msra.gmra.mrb[10].mxu0 %vm1566_vm4, %v1550_v24 }
 0xbc7   :  { %v3650_v26 = vpop.f32.mrb[10].mxu0 }
 0xbc8   :  { %v1639_v27 = vpop.f32.mrb[11].mxu0  ;;  %v1645_v35 = vadd.f32 %v3650_v26, %v3323_v25 }
 0xbc9   :  { %v1640_v33 = vadd.f32 %v3323_v25, %v1639_v27 }
 0xbca   :  { %v1649_v30 = vadd.f32 %v1645_v35, %v1440_v52 }
 0xbcb   :  { %v1648_v28 = vadd.f32 %v1640_v33, %v1439_v50  ;;  %v3331_v50 = vld [vmem:[%s4801_s4 + $0x38] sm:$0xff]  ;;  %s3267_s4 = sshll.u32 %s4225_s29, 4  ;;  %s3268_s4 = int_to_ptr.vmem [resolvable:$true] %s3267_s4 }
 0xbcc   :  { %v1655_v31 = vsel %vm99_vm0, %v1649_v30, 0.0  ;;  %v3844_v51 = vpack.c.bf16 %v3331_v50, %v3330_v38  ;;  %p4186_p11 = scmp.lt.s32.totalorder %s3268_s4, %s3268_s4 }
 0xbcd   :  { %v1652_v29 = vsel %vm99_vm0, %v1648_v28, 0.0 }
 0xbce   :  { %1653 = vadd.xlane.f32.xlu0 %v1652_v29  ;;  %3845 = vmatprep.subr.bf16.mxu1 %v3844_v51 }
 0xbcf   :  { %3847 = vmatpush3.bf16.msra.mxu1 %v3844_v51 }
 0xbd2   :  { %1656 = vadd.xlane.f32.xlu0 %v1655_v31 }
 0xc5b   :  { %v1654_v32 = vpop.xlane.xlu0 %1653 }
 0xc5c   :  { %v1658_v34 = vmul.f32 0.03125, %v1654_v32 }
 0xc5e   :  { %v1660_v36 = vsub.f32 %v1648_v28, %v1658_v34 }
 0xc5f   :  { %v1657_v37 = vpop.xlane.xlu0 %1656 }
 0xc60   :  { %v1659_v39 = vmul.f32 0.03125, %v1657_v37  ;;  %v1662_v42 = vmul.f32 %v1660_v36, %v1660_v36 }
 0xc62   :  { %v1661_v43 = vsub.f32 %v1649_v30, %v1659_v39  ;;  %v1664_v44 = vsel %vm99_vm0, %v1662_v42, 0.0 }
 0xc63   :  { %1665 = vadd.xlane.f32.xlu0 %v1664_v44 }
 0xc64   :  { %v1663_v45 = vmul.f32 %v1661_v43, %v1661_v43 }
 0xc66   :  { %v1667_v40 = vsel %vm99_vm0, %v1663_v45, 0.0 }
 0xc67   :  { %1668 = vadd.xlane.f32.xlu1 %v1667_v40 }
 0xcf0   :  { %v1666_v52 = vpop.xlane.xlu0 %1665 }
 0xcf1   :  { %v1670_v53 = vmul.f32 0.03125, %v1666_v52 }
 0xcf3   :  { %v1672_v54 = vadd.f32 1e-12, %v1670_v53 }
 0xcf4   :  { %v1669_v55 = vpop.xlane.xlu1 %1668 }
 0xcf5   :  { %4065 = vrsqrt.f32 %v1672_v54  ;;  %v1671_v56 = vmul.f32 0.03125, %v1669_v55 }
 0xcf7   :  { %v1673_v57 = vadd.f32 1e-12, %v1671_v56 }
 0xcf9   :  { %4067 = vrsqrt.f32 %v1673_v57 }
 0xcff   :  { %v4066_v58 = vpop.eup %4065 }
 0xd00   :  { %v1676_v61 = vmul.f32 %v4066_v58, %v1660_v36 }
 0xd02   :  { %v1684_v0 = vmul.f32 %v3326_v59, %v1676_v61 }
 0xd03   :  { %v4068_v1 = vpop.eup %4067 }
 0xd04   :  { %v1677_v2 = vmul.f32 %v4068_v1, %v1661_v43  ;;  %v4591_v3 = vadd.f32 %v3327_v62, %v1684_v0 }
 0xd06   :  { %v1685_v4 = vmul.f32 %v3326_v59, %v1677_v2  ;;  %3659 = vmatprep.mubr.msk.f32.mxu1 %vm99_vm0, %v4591_v3 }
 0xd08   :  { %v4595_v41 = vadd.f32 %v3327_v62, %v1685_v4 }
 0xd0a   :  { %3660 = vmatmul.mubr.msk.f32.vlgmr.msra.gmra.mrb[12].mxu1 %vm99_vm0, %v4595_v41 }
 0xddd   :  { %v3661_v6 = vpop.f32.mrb[12].mxu1 }
 0xdde   :  { %v4602_v7 = vadd.f32 %v3661_v6, %v3333_v5  ;;  %v1779_v8 = vpop.f32.mrb[13].mxu1 }
 0xddf   :  { %v4604_v9 = vadd.f32 %v3333_v5, %v1779_v8 }
 0xde1   :  { %3666 = vmatprep.mubr.msk.f32.mxu1 %vm241_vm1, %v4604_v9  ;;  %v4610_v10 = vpack.i.bf16 %v4602_v7, %v4604_v9 }
 0xde3   :  { %3987 = vrot.lane.b32.xlu1 %v4610_v10, %s4214_s2  ;;  %3982 = vrot.lane.b32.xlu0 %v4610_v10, %s4215_s0 }
 0xde7   :  { %1992 = vrot.lane.b32.xlu1 %v4604_v9, %s4216_s17  ;;  %3992 = vrot.lane.b32.xlu0 %v4610_v10, %s4217_s24 }
 0xdeb   :  { %1994 = vrot.lane.b32.xlu1 %v4602_v7, %s4216_s17  ;;  %2362 = vrot.lane.b32.xlu0 %v4602_v7, %s4218_s18 }
 0xdef   :  { %2360 = vrot.lane.b32.xlu1 %v4604_v9, %s4218_s18 }
 0xe55   :  { %v3988_v11 = vpop.permute.xlu1 %3987  ;;  %v3983_v12 = vpop.permute.xlu0 %3982 }
 0xe56   :  { %v3990_v13 = vunpack.i.h.bf16 %v3988_v11  ;;  %v3989_v14 = vunpack.i.l.bf16 %v3988_v11  ;;  %v3985_v15 = vunpack.i.h.bf16 %v3983_v12  ;;  %v3984_v16 = vunpack.i.l.bf16 %v3983_v12 }
 0xe58   :  { %v3848_v17 = vpack.c.bf16 %v3985_v15, %v3984_v16  ;;  %v3858_v18 = vpack.c.bf16 %v3990_v13, %v3989_v14 }
 0xe59   :  { %v3993_v19 = vpop.permute.xlu0 %3992  ;;  %v1993_v20 = vpop.permute.xlu1 %1992 }
 0xe5a   :  { %3850 = vmatprep.subr.msk.bf16.mxu1 %vm4410_vm2, %v3848_v17  ;;  %v3995_v21 = vunpack.i.h.bf16 %v3993_v19  ;;  %v3994_v22 = vunpack.i.l.bf16 %v3993_v19 }
 0xe5b   :  { %3853 = vmatpush3.bf16.xpose.msk.msra.mxu1 %vm4410_vm2, %v3848_v17 }
 0xe5c   :  { %3860 = vmatprep.subr.msk.bf16.mxu1 %vm4410_vm2, %v3858_v18  ;;  %v3868_v23 = vpack.c.bf16 %v3995_v21, %v3994_v22 }
 0xe5d   :  { %v1995_v24 = vpop.permute.xlu1 %1994  ;;  %v2363_v26 = vpop.permute.xlu0 %2362 }
 0xe61   :  { %v2361_v25 = vpop.permute.xlu1 %2360 }
 0xe62   :  { %3667 = vmatmul.mubr.msk.f32.vlgmr.msra.gmra.mrb[14].mxu1 %vm241_vm1, %v4602_v7 }
 0xe63   :  { %3863 = vmatpush3.bf16.xpose.msk.msra.mxu1 %vm4410_vm2, %v3858_v18  ;;  %3680 = vmatprep.mubr.msk.f32.mxu1 %vm241_vm1, %v1993_v20 }
 0xe64   :  { %3870 = vmatprep.subr.msk.bf16.mxu1 %vm4410_vm2, %v3868_v23 }
 0xe6a   :  { %3681 = vmatmul.mubr.msk.f32.vlgmr.msra.gmra.mrb[16].mxu1 %vm241_vm1, %v1995_v24 }
 0xe6b   :  { %3873 = vmatpush3.bf16.xpose.msk.msra.mxu1 %vm4410_vm2, %v3868_v23  ;;  %3704 = vmatprep.mubr.msk.f32.mxu1 %vm241_vm1, %v2361_v25 }
 0xe72   :  { %3705 = vmatmul.mubr.msk.f32.vlgmr.msra.gmra.mrb[18].mxu1 %vm241_vm1, %v2363_v26 }
 0xf35   :  { %v3668_v27 = vpop.f32.mrb[14].mxu1 }
 0xf36   :  { %v1878_v35 = vmul.f32 0.35355338, %v3668_v27  ;;  %v1868_v33 = vpop.f32.mrb[15].mxu1 }
 0xf37   :  { %v1877_v28 = vmul.f32 0.35355338, %v1868_v33 }
 0xf38   :  { %v1880_v29 = vadd.f32 %v1878_v35, %v4432_v60 }
 0xf39   :  { %v1879_v30 = vadd.f32 %v1877_v28, %v4434_v63 }
 0xf3a   :  { %v1884_v31 = vsel %vm329_vm3, %v1880_v29, -inf }
 0xf3b   :  { %1885 = vmax.xlane.f32.xlu0 %v1884_v31  ;;  %v1881_v32 = vsel %vm329_vm3, %v1879_v30, -inf }
 0xf3c   :  { %1882 = vmax.xlane.f32.xlu1 %v1881_v32 }
 0xf3d   :  { %v3682_v34 = vpop.f32.mrb[16].mxu1 }
 0xf3e   :  { %v2074_v36 = vpop.f32.mrb[17].mxu1  ;;  %v2084_v37 = vmul.f32 0.35355338, %v3682_v34 }
 0xf3f   :  { %v2083_v39 = vmul.f32 0.35355338, %v2074_v36 }
 0xf40   :  { %v2086_v44 = vadd.f32 %v2084_v37, %v4432_v60 }
 0xf41   :  { %v2085_v42 = vadd.f32 %v2083_v39, %v4434_v63 }
 0xf42   :  { %v2090_v46 = vsel %vm329_vm3, %v2086_v44, -inf }
 0xf43   :  { %v2087_v43 = vsel %vm329_vm3, %v2085_v42, -inf }
 0xf44   :  { %2088 = vmax.xlane.f32.xlu0 %v2087_v43 }
 0xf45   :  { %v3706_v45 = vpop.f32.mrb[18].mxu1 }
 0xf46   :  { %v2442_v40 = vpop.f32.mrb[19].mxu1  ;;  %v2452_v11 = vmul.f32 0.35355338, %v3706_v45 }
 0xf47   :  { %v2451_v6 = vmul.f32 0.35355338, %v2442_v40 }
 0xf48   :  { %2091 = vmax.xlane.f32.xlu0 %v2090_v46  ;;  %v2454_v13 = vadd.f32 %v2452_v11, %v4432_v60 }
 0xf49   :  { %v2453_v8 = vadd.f32 %v2451_v6, %v4434_v63 }
 0xf4a   :  { %v2458_v14 = vsel %vm329_vm3, %v2454_v13, -inf }
 0xf4b   :  { %v2455_v12 = vsel %vm329_vm3, %v2453_v8, -inf }
 0xfc8   :  { %v1886_v47 = vpop.xlane.xlu0 %1885 }
 0xfc9   :  { %v1888_v49 = vsub.f32 %v1880_v29, %v1886_v47  ;;  %v1883_v38 = vpop.xlane.xlu1 %1882 }
 0xfca   :  { %v1887_v50 = vsub.f32 %v1879_v30, %v1883_v38  ;;  %v3342_v38 = vld [vmem:[%s4803_s6 + $0x20] sm:$0xff] }
 0xfcb   :  { %v1891_v51 = vmul.f32 1.442695, %v1888_v49  ;;  %v3349_v49 = vld [vmem:[%s4803_s6 + $0x28] sm:$0xff] }
 0xfcc   :  { %v1889_v52 = vmul.f32 1.442695, %v1887_v50 }
 0xfcd   :  { %4069 = vpow2.f32 %v1891_v51 }
 0xfce   :  { %4071 = vpow2.f32 %v1889_v52 }
 0xfd1   :  { %v2089_v53 = vpop.xlane.xlu0 %2088 }
 0xfd2   :  { %v2093_v54 = vsub.f32 %v2085_v42, %v2089_v53 }
 0xfd4   :  { %v2095_v55 = vmul.f32 1.442695, %v2093_v54 }
 0xfd5   :  { %v2092_v56 = vpop.xlane.xlu0 %2091 }
 0xfd6   :  { %4073 = vpow2.f32 %v2095_v55  ;;  %v2094_v57 = vsub.f32 %v2086_v44, %v2092_v56 }
 0xfd7   :  { %v4070_v58 = vpop.eup %4069 }
 0xfd8   :  { %v4072_v59 = vpop.eup %4071  ;;  %v2097_v61 = vmul.f32 1.442695, %v2094_v57  ;;  %v1896_v62 = vsel %vm329_vm3, %v4070_v58, 0.0 }
 0xfd9   :  { %1897 = vadd.xlane.f32.xlu0 %v1896_v62  ;;  %v1893_v0 = vsel %vm329_vm3, %v4072_v59, 0.0 }
 0xfda   :  { %4075 = vpow2.f32 %v2097_v61  ;;  %1894 = vadd.xlane.f32.xlu1 %v1893_v0 }
 0xfe0   :  { %v4074_v1 = vpop.eup %4073 }
 0xfe1   :  { %v2099_v2 = vsel %vm329_vm3, %v4074_v1, 0.0 }
 0xfe2   :  { %2100 = vadd.xlane.f32.xlu1 %v2099_v2 }
 0xfe4   :  { %v4076_v4 = vpop.eup %4075 }
 0xfe5   :  { %v2102_v5 = vsel %vm329_vm3, %v4076_v4, 0.0 }
 0xfe6   :  { %2103 = vadd.xlane.f32.xlu0 %v2102_v5 }
 0xff3   :  { %3997 = vrot.lane.b32.xlu1 %v4610_v10, %s4219_s19  ;;  %s4820_s19 = smov 40  }
 0xff7   :  { %4007 = vrot.lane.b32.xlu1 %v4610_v10, %s4220_s3 }
 0xffb   :  { %2649 = vrot.lane.b32.xlu1 %v4604_v9, %s4221_s26 }
 0xffc   :  { %4002 = vrot.lane.b32.xlu0 %v4610_v10, %s4222_s1 }
 0xfff   :  { %2651 = vrot.lane.b32.xlu1 %v4602_v7, %s4221_s26 }
0x101b   :  { %2456 = vmax.xlane.f32.xlu0 %v2455_v12  ;;  %v4114_v12 = vld [vmem:[#allocation5 + $0x8] sm:$0xff] }
0x1023   :  { %2459 = vmax.xlane.f32.xlu1 %v2458_v14 }
0x1066   :  { %v1898_v9 = vpop.xlane.xlu0 %1897 }
0x1067   :  { %v1895_v15 = vpop.xlane.xlu1 %1894 }
0x1068   :  { %4077 = vrcp.f32 %v1895_v15 }
0x1069   :  { %4079 = vrcp.f32 %v1898_v9  ;;  %v3360_v9 = vld [vmem:[%s4803_s6 + $0x30] sm:$0xff] }
0x106f   :  { %v2101_v16 = vpop.xlane.xlu1 %2100 }
0x1070   :  { %4081 = vrcp.f32 %v2101_v16 }
0x1072   :  { %v4078_v17 = vpop.eup %4077 }
0x1073   :  { %v2104_v7 = vpop.xlane.xlu0 %2103  ;;  %v3998_v18 = vpop.permute.xlu1 %3997  ;;  %v1901_v19 = vmul.f32 %v4078_v17, %v4072_v59 }
0x1074   :  { %4083 = vrcp.f32 %v2104_v7  ;;  %v4000_v63 = vunpack.i.h.bf16 %v3998_v18  ;;  %v3999_v20 = vunpack.i.l.bf16 %v3998_v18  ;;  %v4080_v60 = vpop.eup %4079 }
0x1075   :  { %3673 = vmatprep.mubr.msk.f32.mxu0 %vm329_vm3, %v1901_v19  ;;  %v1902_v33 = vmul.f32 %v4080_v60, %v4070_v58 }
0x1076   :  { %v3854_v21 = vpack.c.bf16 %v4000_v63, %v3999_v20 }
0x1077   :  { %v4003_v22 = vpop.permute.xlu0 %4002  ;;  %v4008_v23 = vpop.permute.xlu1 %4007 }
0x1078   :  { %v4005_v24 = vunpack.i.h.bf16 %v4003_v22  ;;  %v4004_v25 = vunpack.i.l.bf16 %v4003_v22  ;;  %v4010_v26 = vunpack.i.h.bf16 %v4008_v23  ;;  %v4009_v27 = vunpack.i.l.bf16 %v4008_v23  ;;  %3855 = vmatprep.subr.bf16.mxu0 %v3854_v21 }
0x1079   :  { %3857 = vmatpush3.bf16.msra.mxu0 %v3854_v21 }
0x107a   :  { %v4082_v35 = vpop.eup %4081  ;;  %v3864_v28 = vpack.c.bf16 %v4005_v24, %v4004_v25  ;;  %v3878_v29 = vpack.c.bf16 %v4010_v26, %v4009_v27 }
0x107b   :  { %v2650_v30 = vpop.permute.xlu1 %2649  ;;  %v2107_v31 = vmul.f32 %v4082_v35, %v4074_v1 }
0x107c   :  { %3674 = vmatmul.mubr.msk.f32.vlgmr.msra.gmra.mrb[12].mxu0 %vm329_vm3, %v1902_v33  ;;  %3865 = vmatprep.subr.bf16.mxu0 %v3864_v28 }
0x107d   :  { %3880 = vmatprep.subr.msk.bf16.mxu1 %vm4410_vm2, %v3878_v29  ;;  %3723 = vmatprep.mubr.msk.f32.mxu1 %vm241_vm1, %v2650_v30 }
0x107e   :  { %v4084_v32 = vpop.eup %4083  ;;  %3867 = vmatpush3.bf16.msra.mxu0 %v3864_v28  ;;  %3687 = vmatprep.mubr.msk.f32.mxu0 %vm329_vm3, %v2107_v31 }
0x107f   :  { %v2108_v34 = vmul.f32 %v4084_v32, %v4076_v4  ;;  %3883 = vmatpush3.bf16.xpose.msk.msra.mxu1 %vm4410_vm2, %v3878_v29  ;;  %v2652_v36 = vpop.permute.xlu1 %2651  ;;  %3690 = vmatprep.subr.mxu0 %v3349_v49  ;;  %v4113_v4 = vld [vmem:[#allocation5] sm:$0xff]  ;;  %v3369_v29 = vld [vmem:[%s4803_s6 + $0x38] sm:$0xff] }
0x1081   :  { %3688 = vmatmul.mubr.msk.f32.vlgmr.msra.gmra.mrb[14].mxu0 %vm329_vm3, %v2108_v34 }
0x1082   :  { %3691 = vmatpush3.msra.mxu0 %v3349_v49 }
0x1083   :  { %3695 = vmatprep.subr.mxu0 %v3342_v38 }
0x1086   :  { %3724 = vmatmul.mubr.msk.f32.vlgmr.msra.gmra.mrb[20].mxu1 %vm241_vm1, %v2652_v36 }
0x10a8   :  { %v2457_v37 = vpop.xlane.xlu0 %2456 }
0x10a9   :  { %v2461_v39 = vsub.f32 %v2453_v8, %v2457_v37  ;;  %v3373_v37 = vld [vmem:[%s4804_s7 + $0x1] ss:$0 sm:$0xff] }
0x10ab   :  { %v2463_v44 = vmul.f32 1.442695, %v2461_v39 }
0x10b0   :  { %v2460_v42 = vpop.xlane.xlu1 %2459 }
0x10b1   :  { %v2462_v43 = vsub.f32 %v2454_v13, %v2460_v42 }
0x10b3   :  { %v2465_v45 = vmul.f32 1.442695, %v2462_v43 }
0x10b5   :  { %4085 = vpow2.f32 %v2465_v45 }
0x10b6   :  { %4087 = vpow2.f32 %v2463_v44 }
0x10bf   :  { %v4086_v40 = vpop.eup %4085 }
0x10c0   :  { %v2470_v46 = vsel %vm329_vm3, %v4086_v40, 0.0  ;;  %v4088_v47 = vpop.eup %4087 }
0x10c1   :  { %2471 = vadd.xlane.f32.xlu0 %v2470_v46  ;;  %v2467_v48 = vsel %vm329_vm3, %v4088_v47, 0.0 }
0x10c5   :  { %2468 = vadd.xlane.f32.xlu0 %v2467_v48 }
0x10db   :  { %4012 = vrot.lane.b32.xlu0 %v4610_v10, %s4223_s25 }
0x114e   :  { %v2472_v50 = vpop.xlane.xlu0 %2471 }
0x114f   :  { %v3675_v51 = vpop.f32.mrb[12].mxu0 }
0x1150   :  { %v1981_v52 = vpop.f32.mrb[13].mxu0 }
0x1152   :  { %v2469_v53 = vpop.xlane.xlu0 %2468 }
0x1153   :  { %4089 = vrcp.f32 %v2469_v53 }
0x1154   :  { %4091 = vrcp.f32 %v2472_v50  ;;  %v3689_v54 = vpop.f32.mrb[14].mxu0 }
0x1155   :  { %v2187_v55 = vpop.f32.mrb[15].mxu0 }
0x1156   :  { %v4013_v56 = vpop.permute.xlu0 %4012  ;;  %3692 = vmatprep.mubr.msk.f32.mxu0 %vm241_vm1, %v2187_v55 }
0x1157   :  { %v4015_v57 = vunpack.i.h.bf16 %v4013_v56  ;;  %v4014_v58 = vunpack.i.l.bf16 %v4013_v56  ;;  %3693 = vmatmul.mubr.msk.f32.vlgmr.msra.gmra.mrb[16].mxu0 %vm241_vm1, %v3689_v54  ;;  %v3379_v56 = vld [vmem:[%s4807_s10 + $0x28] sm:$0xff] }
0x1158   :  { %3697 = vmatprep.mubr.msk.f32.mxu0 %vm241_vm1, %v1981_v52  ;;  %3696 = vmatpush3.msra.mxu0 %v3342_v38 }
0x1159   :  { %v3874_v59 = vpack.c.bf16 %v4015_v57, %v4014_v58  ;;  %v3725_v61 = vpop.f32.mrb[20].mxu1  ;;  %v3380_v58 = vld [vmem:[%s4807_s10 + $0x30] sm:$0xff] }
0x115a   :  { %v2731_v62 = vpop.f32.mrb[21].mxu1  ;;  %v2741_v0 = vmul.f32 0.35355338, %v3725_v61 }
0x115b   :  { %v2740_v1 = vmul.f32 0.35355338, %v2731_v62  ;;  %3875 = vmatprep.subr.bf16.mxu0 %v3874_v59 }
0x115c   :  { %v2743_v13 = vadd.f32 %v4114_v12, %v2741_v0  ;;  %v3377_v12 = vld [vmem:[%s4806_s9 + $0x1] ss:$0 sm:$0xff] }
0x115d   :  { %v4090_v2 = vpop.eup %4089  ;;  %v2742_v5 = vadd.f32 %v4113_v4, %v2740_v1 }
0x115e   :  { %v4092_v6 = vpop.eup %4091  ;;  %v2475_v8 = vmul.f32 %v4090_v2, %v4088_v47  ;;  %v2747_v15 = vsel %vm329_vm3, %v2743_v13, -inf }
0x115f   :  { %v2744_v11 = vsel %vm329_vm3, %v2742_v5, -inf  ;;  %3698 = vmatmul.mubr.msk.f32.vlgmr.msra.gmra.mrb[16].mxu0 %vm241_vm1, %v3675_v51  ;;  %v2476_v14 = vmul.f32 %v4092_v6, %v4086_v40 }
0x1160   :  { %2745 = vmax.xlane.f32.xlu1 %v2744_v11  ;;  %3877 = vmatpush3.bf16.msra.mxu0 %v3874_v59  ;;  %v3381_v59 = vld [vmem:[%s4807_s10 + $0x38] sm:$0xff] }
0x1161   :  { %3711 = vmatprep.mubr.msk.f32.mxu0 %vm329_vm3, %v2475_v8  ;;  %3714 = vmatprep.subr.mxu0 %v3360_v9  ;;  %v3892_v61 = vpack.c.bf16 %v3381_v59, %v3380_v58  ;;  %v3376_v8 = vld [vmem:[%s4805_s8 + $0x1] ss:$0 sm:$0xff] }
0x1163   :  { %3712 = vmatmul.mubr.msk.f32.vlgmr.msra.gmra.mrb[18].mxu0 %vm329_vm3, %v2476_v14 }
0x1164   :  { %2748 = vmax.xlane.f32.xlu1 %v2747_v15  ;;  %3715 = vmatpush3.msra.mxu0 %v3360_v9 }
0x11ed   :  { %v2746_v16 = vpop.xlane.xlu1 %2745 }
0x11ee   :  { %v2750_v17 = vsub.f32 %v2742_v5, %v2746_v16 }
0x11f0   :  { %v2752_v19 = vmul.f32 1.442695, %v2750_v17 }
0x11f1   :  { %v2749_v7 = vpop.xlane.xlu1 %2748 }
0x11f2   :  { %v2751_v18 = vsub.f32 %v2743_v13, %v2749_v7  ;;  %v3386_v7 = vld [vmem:[%s4809_s12 + $0x40] sm:$0xff] }
0x11f4   :  { %v2754_v63 = vmul.f32 1.442695, %v2751_v18  ;;  %v3387_v18 = vld [vmem:[%s4809_s12 + $0x48] sm:$0xff] }
0x11f6   :  { %4093 = vpow2.f32 %v2754_v63  ;;  %v3388_v63 = vld [vmem:[%s4809_s12 + $0x50] sm:$0xff] }
0x11f7   :  { %4095 = vpow2.f32 %v2752_v19  ;;  %v3896_v19 = vpack.c.bf16 %v3387_v18, %v3386_v7 }
0x1200   :  { %v4094_v20 = vpop.eup %4093 }
0x1201   :  { %v2759_v21 = vsel %vm329_vm3, %v4094_v20, 0.0  ;;  %v4096_v60 = vpop.eup %4095 }
0x1202   :  { %2760 = vadd.xlane.f32.xlu1 %v2759_v21  ;;  %v2756_v22 = vsel %vm329_vm3, %v4096_v60, 0.0 }
0x1206   :  { %2757 = vadd.xlane.f32.xlu1 %v2756_v22  ;;  %v3391_v22 = vld [vmem:[%s4809_s12 + $0x68] sm:$0xff] }
0x1217   :  { %4017 = vrot.lane.b32.xlu1 %v4610_v10, %s4820_s19 }
0x1236   :  { %v3713_v23 = vpop.f32.mrb[18].mxu0 }
0x1237   :  { %v2555_v24 = vpop.f32.mrb[19].mxu0 }
0x1238   :  { %3716 = vmatprep.mubr.msk.f32.mxu0 %vm241_vm1, %v2555_v24  ;;  %v3392_v24 = vld [vmem:[%s4809_s12 + $0x70] sm:$0xff] }
0x1239   :  { %3717 = vmatmul.mubr.msk.f32.vlgmr.msra.gmra.mrb[16].mxu0 %vm241_vm1, %v3713_v23 }
0x128f   :  { %v2761_v25 = vpop.xlane.xlu1 %2760 }
0x1290   :  { %4097 = vrcp.f32 %v2761_v25  ;;  %v3393_v25 = vld [vmem:[%s4809_s12 + $0x78] sm:$0xff] }
0x1293   :  { %v2758_v26 = vpop.xlane.xlu1 %2757 }
0x1294   :  { %4099 = vrcp.f32 %v2758_v26  ;;  %v3908_v26 = vpack.c.bf16 %v3393_v25, %v3392_v24 }
0x1297   :  { %v4018_v27 = vpop.permute.xlu1 %4017 }
0x1298   :  { %v4020_v35 = vunpack.i.h.bf16 %v4018_v27  ;;  %v4019_v33 = vunpack.i.l.bf16 %v4018_v27  ;;  %v3383_v27 = vld [vmem:[%s4808_s11 + $0x1] ss:$0 sm:$0xff] }
0x129a   :  { %v3884_v28 = vpack.c.bf16 %v4020_v35, %v4019_v33  ;;  %v4098_v10 = vpop.eup %4097 }
0x129b   :  { %v2765_v32 = vmul.f32 %v4098_v10, %v4094_v20  ;;  %v3389_v20 = vld [vmem:[%s4809_s12 + $0x58] sm:$0xff] }
0x129c   :  { %3885 = vmatprep.subr.bf16.mxu0 %v3884_v28  ;;  %v3900_v21 = vpack.c.bf16 %v3389_v20, %v3388_v63 }
0x129d   :  { %3887 = vmatpush3.bf16.msra.mxu0 %v3884_v28 }
0x129e   :  { %v4100_v30 = vpop.eup %4099  ;;  %3733 = vmatprep.subr.mxu0 %v3369_v29 }
0x129f   :  { %v2764_v31 = vmul.f32 %v4100_v30, %v4096_v60  ;;  %v3390_v60 = vld [vmem:[%s4809_s12 + $0x60] sm:$0xff] }
0x12a0   :  { %v3904_v23 = vpack.c.bf16 %v3391_v22, %v3390_v60 }
0x12a1   :  { %3730 = vmatprep.mubr.msk.f32.mxu0 %vm329_vm3, %v2764_v31 }
0x12a2   :  { %3731 = vmatmul.mubr.msk.f32.vlgmr.msra.gmra.mrb[20].mxu0 %vm329_vm3, %v2765_v32 }
0x12a3   :  { %3734 = vmatpush3.msra.mxu0 %v3369_v29 }
0x12a4   :  { %3897 = vmatprep.subr.bf16.mxu0 %v3896_v19 }
0x1375   :  { %v3732_v34 = vpop.f32.mrb[20].mxu0 }
0x1376   :  { %v2844_v36 = vpop.f32.mrb[21].mxu0 }
0x1377   :  { %3735 = vmatprep.mubr.msk.f32.mxu0 %vm241_vm1, %v2844_v36 }
0x1378   :  { %3736 = vmatmul.mubr.msk.f32.vlgmr.msra.gmra.mrb[16].mxu0 %vm241_vm1, %v3732_v34 }
0x1379   :  { %3899 = vmatpush3.bf16.msra.mxu0 %v3896_v19 }
0x137a   :  { %3901 = vmatprep.subr.bf16.mxu0 %v3900_v21 }
0x137d   :  { %3903 = vmatpush3.bf16.msra.mxu0 %v3900_v21 }
0x137e   :  { %3905 = vmatprep.subr.bf16.mxu0 %v3904_v23 }
0x1381   :  { %3907 = vmatpush3.bf16.msra.mxu0 %v3904_v23 }
0x1382   :  { %3909 = vmatprep.subr.bf16.mxu0 %v3908_v26 }
0x1385   :  { %3911 = vmatpush3.bf16.msra.mxu0 %v3908_v26 }
0x144b   :  { %v3737_v39 = vpop.f32.mrb[16].mxu0 }
0x144c   :  { %v2947_v42 = vadd.f32 %v3737_v39, %v3373_v37  ;;  %v2927_v43 = vpop.f32.mrb[17].mxu0 }
0x144d   :  { %v2946_v44 = vadd.f32 %v3373_v37, %v2927_v43 }
0x144e   :  { %v2949_v45 = vadd.f32 %v2947_v42, %v4595_v41 }
0x144f   :  { %v2948_v40 = vadd.f32 %v2946_v44, %v4591_v3  ;;  %v3378_v3 = vld [vmem:[%s4807_s10 + $0x20] sm:$0xff] }
0x1450   :  { %v2957_v46 = vsel %vm99_vm0, %v2949_v45, 0.0  ;;  %v3888_v57 = vpack.c.bf16 %v3379_v56, %v3378_v3 }
0x1451   :  { %2958 = vadd.xlane.f32.xlu1 %v2957_v46  ;;  %v2954_v47 = vsel %vm99_vm0, %v2948_v40, 0.0 }
0x1452   :  { %2955 = vadd.xlane.f32.xlu0 %v2954_v47  ;;  %3889 = vmatprep.subr.bf16.mxu1 %v3888_v57 }
0x1453   :  { %3891 = vmatpush3.bf16.msra.mxu1 %v3888_v57 }
0x1454   :  { %3893 = vmatprep.subr.bf16.mxu1 %v3892_v61 }
0x1457   :  { %3895 = vmatpush3.bf16.msra.mxu1 %v3892_v61 }
0x14de   :  { %v2959_v48 = vpop.xlane.xlu1 %2958 }
0x14df   :  { %v2961_v49 = vmul.f32 0.03125, %v2959_v48  ;;  %v2956_v38 = vpop.xlane.xlu0 %2955 }
0x14e0   :  { %v2960_v50 = vmul.f32 0.03125, %v2956_v38 }
0x14e1   :  { %v2963_v51 = vsub.f32 %v2949_v45, %v2961_v49 }
0x14e2   :  { %v2962_v52 = vsub.f32 %v2948_v40, %v2960_v50  ;;  %v3395_v50 = vld [vmem:[%s4810_s13 + $0x1] ss:$0 sm:$0xff] }
0x14e3   :  { %v2965_v55 = vmul.f32 %v2963_v51, %v2963_v51 }
0x14e4   :  { %v2964_v53 = vmul.f32 %v2962_v52, %v2962_v52 }
0x14e5   :  { %v2969_v41 = vsel %vm99_vm0, %v2965_v55, 0.0 }
0x14e6   :  { %v2966_v54 = vsel %vm99_vm0, %v2964_v53, 0.0 }
0x14e7   :  { %2967 = vadd.xlane.f32.xlu0 %v2966_v54 }
0x14eb   :  { %2970 = vadd.xlane.f32.xlu0 %v2969_v41 }
0x1574   :  { %v2968_v62 = vpop.xlane.xlu0 %2967 }
0x1575   :  { %v2972_v0 = vmul.f32 0.03125, %v2968_v62 }
0x1577   :  { %v2974_v1 = vadd.f32 1e-12, %v2972_v0 }
0x1578   :  { %v2971_v2 = vpop.xlane.xlu0 %2970 }
0x1579   :  { %4101 = vrsqrt.f32 %v2974_v1  ;;  %v2973_v4 = vmul.f32 0.03125, %v2971_v2 }
0x157b   :  { %v2975_v5 = vadd.f32 1e-12, %v2973_v4 }
0x157d   :  { %4103 = vrsqrt.f32 %v2975_v5 }
0x1583   :  { %v4102_v6 = vpop.eup %4101 }
0x1584   :  { %v2978_v11 = vmul.f32 %v4102_v6, %v2962_v52 }
0x1586   :  { %v2986_v13 = vmul.f32 %v3376_v8, %v2978_v11 }
0x1587   :  { %v4104_v14 = vpop.eup %4103 }
0x1588   :  { %v2979_v15 = vmul.f32 %v4104_v14, %v2963_v51  ;;  %v2994_v9 = vadd.f32 %v3377_v12, %v2986_v13 }
0x158a   :  { %v2987_v16 = vmul.f32 %v3376_v8, %v2979_v15  ;;  %3746 = vmatprep.mubr.msk.f32.mxu1 %vm99_vm0, %v2994_v9 }
0x158c   :  { %v2995_v17 = vadd.f32 %v3377_v12, %v2987_v16 }
0x158e   :  { %3747 = vmatmul.mubr.msk.f32.vlgmr.msra.gmra.mrb[22].mxu1 %vm99_vm0, %v2995_v17 }
0x1661   :  { %v3748_v35 = vpop.f32.mrb[22].mxu1 }
0x1662   :  { %v3087_v33 = vadd.f32 %v3748_v35, %v3383_v27  ;;  %v3081_v28 = vpop.f32.mrb[23].mxu1 }
0x1663   :  { %v3082_v29 = vadd.f32 %v3383_v27, %v3081_v28 }
0x1664   :  { %v3091_v10 = vmul.f32 %v3087_v33, %v3087_v33 }
0x1665   :  { %v3090_v30 = vmul.f32 %v3082_v29, %v3082_v29 }
0x1666   :  { %v3093_v31 = vmul.f32 %v3091_v10, %v3087_v33 }
0x1667   :  { %v3092_v32 = vmul.f32 %v3090_v30, %v3082_v29 }
0x1668   :  { %v3095_v34 = vmul.f32 0.044715, %v3093_v31 }
0x1669   :  { %v3094_v36 = vmul.f32 0.044715, %v3092_v32 }
0x166a   :  { %v3097_v37 = vadd.f32 %v3095_v34, %v3087_v33 }
0x166b   :  { %v3096_v39 = vadd.f32 %v3094_v36, %v3082_v29 }
0x166c   :  { %v3099_v42 = vmul.f32 0.7978846, %v3097_v37 }
0x166d   :  { %v3098_v43 = vmul.f32 0.7978846, %v3096_v39 }
0x166e   :  { %4105 = vtanh.f32 %v3099_v42 }
0x166f   :  { %4107 = vtanh.f32 %v3098_v43 }
0x1678   :  { %v4106_v44 = vpop.eup %4105 }
0x1679   :  { %v4108_v45 = vpop.eup %4107  ;;  %v3103_v40 = vadd.f32 1.0, %v4106_v44 }
0x167a   :  { %v3102_v46 = vadd.f32 1.0, %v4108_v45 }
0x167b   :  { %v3105_v47 = vmul.f32 0.5, %v3103_v40 }
0x167c   :  { %v3104_v48 = vmul.f32 0.5, %v3102_v46 }
0x167d   :  { %v3107_v38 = vmul.f32 %v3105_v47, %v3087_v33 }
0x167e   :  { %v3106_v49 = vmul.f32 %v3104_v48, %v3082_v29 }
0x1680   :  { %3765 = vmatprep.mubr.msk.f32.mxu0 %vm1566_vm4, %v3106_v49 }
0x1681   :  { %3766 = vmatmul.mubr.msk.f32.vlgmr.msra.gmra.mrb[22].mxu0 %vm1566_vm4, %v3107_v38 }
0x1754   :  { %v3767_v51 = vpop.f32.mrb[22].mxu0 }
0x1755   :  { %v3203_v52 = vadd.f32 %v3767_v51, %v3395_v50  ;;  %v3197_v53 = vpop.f32.mrb[23].mxu0 }
0x1756   :  { %v3198_v54 = vadd.f32 %v3395_v50, %v3197_v53 }
0x1757   :  { %v3207_v55 = vadd.f32 %v3203_v52, %v2995_v17  ;;  %v3401_v17 = vld [vmem:[%s4812_s15 + $0x1] ss:$0 sm:$0xff] }
0x1758   :  { %v3206_v3 = vadd.f32 %v3198_v54, %v2994_v9  ;;  %v3400_v9 = vld [vmem:[%s4811_s14 + $0x1] ss:$0 sm:$0xff]  ;;  %s4181_s14 = scalar_lea.vmem %s3268_s4, 32 }
0x1759   :  { %v3215_v41 = vsel %vm99_vm0, %v3207_v55, 0.0  ;;  %p4182_p10 = scmp.ne.s32.totalorder %s3268_s4, %s4181_s14  ;;  %p4187_p12 = scmp.lt.s32.totalorder %s4181_s14, %s4181_s14 }
0x175a   :  { %3216 = vadd.xlane.f32.xlu0 %v3215_v41  ;;  %v3212_v56 = vsel %vm99_vm0, %v3206_v3, 0.0 }
0x175b   :  { %p4188_p13 = por %p4187_p12, %p4186_p11 }
0x175d   :  { %p4189_p0 = pnand %p4188_p13, %p4182_p10 }
0x175e   :  { %3213 = vadd.xlane.f32.xlu0 %v3212_v56 }
0x17e7   :  { %v3217_v57 = vpop.xlane.xlu0 %3216 }
0x17e8   :  { %v3219_v58 = vmul.f32 0.03125, %v3217_v57 }
0x17ea   :  { %v3221_v59 = vsub.f32 %v3207_v55, %v3219_v58 }
0x17eb   :  { %v3214_v61 = vpop.xlane.xlu0 %3213 }
0x17ec   :  { %v3218_v62 = vmul.f32 0.03125, %v3214_v61  ;;  %v3223_v0 = vmul.f32 %v3221_v59, %v3221_v59 }
0x17ee   :  { %v3220_v1 = vsub.f32 %v3206_v3, %v3218_v62  ;;  %v3227_v2 = vsel %vm99_vm0, %v3223_v0, 0.0 }
0x17ef   :  { %3228 = vadd.xlane.f32.xlu0 %v3227_v2 }
0x17f0   :  { %v3222_v4 = vmul.f32 %v3220_v1, %v3220_v1 }
0x17f2   :  { %v3224_v5 = vsel %vm99_vm0, %v3222_v4, 0.0 }
0x17f3   :  { %3225 = vadd.xlane.f32.xlu1 %v3224_v5 }
0x187c   :  { %v3229_v6 = vpop.xlane.xlu0 %3228 }
0x187d   :  { %v3231_v8 = vmul.f32 0.03125, %v3229_v6 }
0x187f   :  { %v3233_v11 = vadd.f32 1e-12, %v3231_v8 }
0x1880   :  { %v3226_v12 = vpop.xlane.xlu1 %3225 }
0x1881   :  { %4109 = vrsqrt.f32 %v3233_v11  ;;  %v3230_v13 = vmul.f32 0.03125, %v3226_v12 }
0x1883   :  { %v3232_v14 = vadd.f32 1e-12, %v3230_v13 }
0x1885   :  { %4111 = vrsqrt.f32 %v3232_v14 }
0x188b   :  { %v4110_v15 = vpop.eup %4109 }
0x188c   :  { %v3237_v16 = vmul.f32 %v4110_v15, %v3221_v59 }
0x188e   :  { %v3245_v7 = vmul.f32 %v3400_v9, %v3237_v16 }
0x188f   :  { %v4112_v18 = vpop.eup %4111 }
0x1890   :  { %v3236_v19 = vmul.f32 %v4112_v18, %v3220_v1  ;;  %v3253_v63 = vadd.f32 %v3401_v17, %v3245_v7 }
0x1892   :  { %v3244_v20 = vmul.f32 %v3400_v9, %v3236_v19  ;;  %v3255_v60 = vrot.slane %v3253_v63, 7 }
0x1894   :  { %v3252_v21 = vadd.f32 %v3401_v17, %v3244_v20 }
0x1896   :  { %v3258_v22 = vsel %vm3257_vm5, %v3252_v21, %v3255_v60 }
0x1897   :  { %3260 = vst.msk [vmem:[#allocation8] sm:$0x3] %vm3259_vm6, %v3258_v22 }
0x1898   :  { %4192 = shalt.err (!%p4189_p0)
}
0x1899   :  { %s4193_s5 = scalar_lea.hbm %s4813_s16, 32 }
0x189a   :  { %p4194_p1 = scmp.ne.s32.totalorder %s4813_s16, %s4193_s5  ;;  %p4197_p2 = scmp.lt.u32.totalorder %s4193_s5, %s4813_s16 }
0x189c   :  { %p4199_p3 = pnand %p4197_p2, %p4194_p1 }
0x189e   :  { %4202 = shalt.err (!%p4199_p3)
}
0x189f   :  { %3270 = dma.vmem_to_hbm [thread:$0]  %s3268_s4, 32, %s4813_s16, [#allocation4]  }
0x18a0   :  { %4207 = dma.done.wait [#allocation4], 32  }
0x18a1   :  { %4208 = vsyncadd [#allocation4], 4294967264 }
0x18a2   :  { %3274 = vsyncpa [#allocation3], 1 }
0x18a3   :  { %3275 = vsyncpa [#allocation6], 1 }
0x18a4   :  { %3276 = vsyncpa [#allocation4], 1 }

</bundles_post_ra>
